<compile_context>
chip_gen: v7x
topology: tpu7x:2x2x1
jax: 0.10.0
libtpu: 0.0.40
codegen_flags: <defaults>
</compile_context>

<pallas_src>
import functools

import jax
import jax.numpy as jnp
from jax.experimental import pallas as pl
from jax.experimental.pallas import tpu as pltpu


# ---------------------------------------------------------------------------
# Fused Glu kernel (one batch element per grid step)
# ---------------------------------------------------------------------------
def _glu_kernel(x_ref, w_in_ref, a_lr_ref, g_lr_ref, b_lr_ref, wssc_ref,
                wdil_ref, a_o_ref, g_o_ref, b_o_ref, w_out_ref, o_ref,
                *, T, H, K, D):
    # x_ref   : (T, C)        channels-last input slab (C = 256)
    # w_in_ref: (C, H)        in_conv weight (transposed), H = 64
    # a/g/b_lr: (1, 2H)       PReLU alpha / InstanceNorm gamma,beta, left|right
    # wssc_ref: (K, 2H)       ShareSepConv weights broadcast per column
    # wdil_ref: (5*2H, 2H)    block-diagonal fused dilated-conv weight
    # a/g/b_o : (1, H)        out-branch PReLU / InstanceNorm params
    # w_out   : (H, C)        out_conv weight (transposed)
    # o_ref   : (T, C)
    eps = 1e-5
    x = x_ref[...]                                                  # (T, C)

    # ---- in_conv: pointwise 256 -> 64 -------------------------------------
    y = jnp.dot(x, w_in_ref[...], preferred_element_type=jnp.float32)  # (T, H)

    # ---- left | right branches fused into one lane-dense (T, 2H) slab -----
    y2 = jnp.concatenate([y, y], axis=1)                            # (T, 2H)
    y2 = jnp.where(y2 >= 0.0, y2, a_lr_ref[...] * y2)               # PReLU_l|r
    mean = jnp.mean(y2, axis=0, keepdims=True)
    dif = y2 - mean
    var = jnp.mean(dif * dif, axis=0, keepdims=True)
    z = dif * jax.lax.rsqrt(var + eps)
    z = z * g_lr_ref[...] + b_lr_ref[...]                           # InstanceNorm

    # ---- ShareSepConv: K-tap shared-weight causal depthwise conv ----------
    wssc = wssc_ref[...]                                            # (K, 2H)
    if K > 1:
        zp = jnp.concatenate(
            [jnp.zeros((K - 1, z.shape[1]), z.dtype), z], axis=0)   # (T+K-1, 2H)
    else:
        zp = z
    zs = wssc[0:1, :] * zp[0:T, :]
    for j in range(1, K):
        zs = zs + wssc[j:j + 1, :] * zp[j:j + T, :]                 # (T, 2H)

    # ---- causal pad 4D + dilated conv (kernel 5, dilation D) --------------
    # left/right convs fused into ONE block-diagonal matmul, N = 2H = 128.
    zsp = jnp.concatenate(
        [jnp.zeros((4 * D, zs.shape[1]), zs.dtype), zs], axis=0)    # (T+4D, 2H)
    cat = jnp.concatenate([zsp[k * D:k * D + T, :] for k in range(5)],
                          axis=1)                                   # (T, 5*2H)
    g = jnp.dot(cat, wdil_ref[...], preferred_element_type=jnp.float32)  # (T, 2H)

    gated = g[:, :H] * jax.nn.sigmoid(g[:, H:])                     # (T, H)

    # ---- out branch: PReLU + InstanceNorm + pointwise 64 -> 256 + residual -
    u = jnp.where(gated >= 0.0, gated, a_o_ref[...] * gated)
    mo = jnp.mean(u, axis=0, keepdims=True)
    do = u - mo
    vo = jnp.mean(do * do, axis=0, keepdims=True)
    un = do * jax.lax.rsqrt(vo + eps)
    un = un * g_o_ref[...] + b_o_ref[...]
    out = jnp.dot(un, w_out_ref[...], preferred_element_type=jnp.float32)
    o_ref[...] = (out + x).astype(o_ref.dtype)                      # residual


# ---------------------------------------------------------------------------
# Wrapper: parameter repacking (pure JAX glue) + pallas_call
# ---------------------------------------------------------------------------
def glu_forward(x_nct, params, dilation):
    """x_nct: (B, 256, T) like the PyTorch module; returns (B, 256, T)."""
    (w_in, a_l, g_l, b_l, ssc_l, w_l,
     a_r, g_r, b_r, ssc_r, w_r,
     a_o, g_o, b_o, w_out) = params
    D = int(dilation)
    K = 2 * D - 1
    B, C, T = x_nct.shape
    H = w_in.shape[0]                                   # 64

    x = jnp.transpose(x_nct, (0, 2, 1))                 # (B, T, C) channels-last

    w_in_t = jnp.transpose(w_in[:, :, 0])               # (C, H)
    a_lr = jnp.concatenate([a_l, a_r]).reshape(1, 2 * H)
    g_lr = jnp.concatenate([g_l, g_r]).reshape(1, 2 * H)
    b_lr = jnp.concatenate([b_l, b_r]).reshape(1, 2 * H)
    wssc = jnp.concatenate(
        [jnp.broadcast_to(ssc_l.reshape(K, 1), (K, H)),
         jnp.broadcast_to(ssc_r.reshape(K, 1), (K, H))], axis=1)    # (K, 2H)

    # Block-diagonal fused dilated-conv weight: (5*2H, 2H)
    wl_t = jnp.transpose(w_l, (2, 1, 0))                # (5, in, out)
    wr_t = jnp.transpose(w_r, (2, 1, 0))
    zero = jnp.zeros((H, H), x.dtype)
    wdil = jnp.concatenate(
        [jnp.concatenate(
            [jnp.concatenate([wl_t[k], zero], axis=1),
             jnp.concatenate([zero, wr_t[k]], axis=1)], axis=0)
         for k in range(5)], axis=0)                    # (5*2H, 2H)

    a_o2 = a_o.reshape(1, H)
    g_o2 = g_o.reshape(1, H)
    b_o2 = b_o.reshape(1, H)
    w_out_t = jnp.transpose(w_out[:, :, 0])             # (H, C)

    kernel = functools.partial(_glu_kernel, T=T, H=H, K=K, D=D)
    full2 = lambda b: (0, 0)
    out = pl.pallas_call(
        kernel,
        out_shape=jax.ShapeDtypeStruct((B, T, C), jnp.float32),
        grid_spec=pltpu.PrefetchScalarGridSpec(
            num_scalar_prefetch=0,
            grid=(B,),
            in_specs=[
                pl.BlockSpec((None, T, C), lambda b: (b, 0, 0)),
                pl.BlockSpec((C, H), full2),
                pl.BlockSpec((1, 2 * H), full2),
                pl.BlockSpec((1, 2 * H), full2),
                pl.BlockSpec((1, 2 * H), full2),
                pl.BlockSpec((K, 2 * H), full2),
                pl.BlockSpec((5 * 2 * H, 2 * H), full2),
                pl.BlockSpec((1, H), full2),
                pl.BlockSpec((1, H), full2),
                pl.BlockSpec((1, H), full2),
                pl.BlockSpec((H, C), full2),
            ],
            out_specs=pl.BlockSpec((None, T, C), lambda b: (b, 0, 0)),
        ),
        compiler_params=pltpu.CompilerParams(
            dimension_semantics=("parallel",)),
    )(x, w_in_t, a_lr, g_lr, b_lr, wssc, wdil, a_o2, g_o2, b_o2, w_out_t)
    return jnp.transpose(out, (0, 2, 1))                # back to (B, C, T)


# ---------------------------------------------------------------------------
# Pure-JAX reference (mirrors the PyTorch module exactly)
# ---------------------------------------------------------------------------
def glu_reference(x, params, dilation):
    (w_in, a_l, g_l, b_l, ssc_l, w_l,
     a_r, g_r, b_r, ssc_r, w_r,
     a_o, g_o, b_o, w_out) = params
    D = int(dilation)
    K = 2 * D - 1
    hp = jax.lax.Precision.HIGHEST
    T = x.shape[2]

    def prelu(v, a):
        return jnp.where(v >= 0.0, v, a[None, :, None] * v)

    def inorm(v, g, b):
        m = jnp.mean(v, axis=2, keepdims=True)
        var = jnp.mean((v - m) ** 2, axis=2, keepdims=True)
        return ((v - m) * jax.lax.rsqrt(var + 1e-5)) * g[None, :, None] \
            + b[None, :, None]

    def sharesep(v, w):                                  # w: (K,)
        vp = jnp.pad(v, ((0, 0), (0, 0), (K - 1, 0)))
        out = jnp.zeros_like(v)
        for j in range(K):
            out = out + w[j] * vp[:, :, j:j + T]
        return out

    def dconv(v, w):                                     # w: (out, in, 5)
        vp = jnp.pad(v, ((0, 0), (0, 0), (4 * D, 0)))
        out = jnp.zeros((v.shape[0], w.shape[0], T), v.dtype)
        for k in range(5):
            out = out + jnp.einsum('oi,bit->bot', w[:, :, k],
                                   vp[:, :, k * D:k * D + T], precision=hp)
        return out

    y = jnp.einsum('oi,bit->bot', w_in[:, :, 0], x, precision=hp)
    xl = dconv(sharesep(inorm(prelu(y, a_l), g_l, b_l), ssc_l.reshape(-1)), w_l)
    xr = dconv(sharesep(inorm(prelu(y, a_r), g_r, b_r), ssc_r.reshape(-1)), w_r)
    gated = xl * jax.nn.sigmoid(xr)
    u = inorm(prelu(gated, a_o), g_o, b_o)
    out = jnp.einsum('oi,bit->bot', w_out[:, :, 0], u, precision=hp)
    return out + x


# ---------------------------------------------------------------------------
if __name__ == "__main__":
    B, C, H, T, D = 2, 256, 64, 32, 2
    K = 2 * D - 1

    key = jax.random.PRNGKey(0)
    keys = jax.random.split(key, 16)
    x = jax.random.normal(keys[0], (B, C, T), jnp.float32)

    def delta_kernel():
        w = jnp.zeros((1, 1, K), jnp.float32)
        return w.at[0, 0, (K - 1) // 2].set(1.0)         # ShareSepConv init

    s = 0.05
    w_in = s * jax.random.normal(keys[1], (H, C, 1), jnp.float32)
    a_l = 0.25 + 0.05 * jax.random.normal(keys[2], (H,), jnp.float32)
    g_l = 1.0 + 0.1 * jax.random.normal(keys[3], (H,), jnp.float32)
    b_l = 0.1 * jax.random.normal(keys[4], (H,), jnp.float32)
    w_l = s * jax.random.normal(keys[5], (H, H, 5), jnp.float32)
    a_r = 0.25 + 0.05 * jax.random.normal(keys[6], (H,), jnp.float32)
    g_r = 1.0 + 0.1 * jax.random.normal(keys[7], (H,), jnp.float32)
    b_r = 0.1 * jax.random.normal(keys[8], (H,), jnp.float32)
    w_r = s * jax.random.normal(keys[9], (H, H, 5), jnp.float32)
    a_o = 0.25 + 0.05 * jax.random.normal(keys[10], (H,), jnp.float32)
    g_o = 1.0 + 0.1 * jax.random.normal(keys[11], (H,), jnp.float32)
    b_o = 0.1 * jax.random.normal(keys[12], (H,), jnp.float32)
    w_out = s * jax.random.normal(keys[13], (C, H, 1), jnp.float32)
    # ShareSepConv weights: delta init + small perturbation (still parameters)
    ssc_l = delta_kernel() + 0.05 * jax.random.normal(keys[14], (1, 1, K), jnp.float32)
    ssc_r = delta_kernel() + 0.05 * jax.random.normal(keys[15], (1, 1, K), jnp.float32)

    params = (w_in, a_l, g_l, b_l, ssc_l, w_l,
              a_r, g_r, b_r, ssc_r, w_r,
              a_o, g_o, b_o, w_out)

    fwd = jax.jit(functools.partial(glu_forward, dilation=D))
    out = jax.block_until_ready(fwd(x, params))

    assert out.shape == (B, C, T), out.shape
    assert bool(jnp.all(jnp.isfinite(out)))

    ref = glu_reference(x, params, D)
    err = float(jnp.max(jnp.abs(out - ref)))
    assert err < 2e-2, f"max abs error vs reference = {err}"
    print("KERNEL_OK")
</pallas_src>

<mosaic_0001>
module attributes {stable_mosaic.version = 11 : i64} {
  func.func @_glu_kernel(%arg0: i32, %arg1: memref<1x32x256xf32, #tpu.memory_space<vmem>>, %arg2: memref<256x64xf32, #tpu.memory_space<vmem>>, %arg3: memref<1x128xf32, #tpu.memory_space<vmem>>, %arg4: memref<1x128xf32, #tpu.memory_space<vmem>>, %arg5: memref<1x128xf32, #tpu.memory_space<vmem>>, %arg6: memref<3x128xf32, #tpu.memory_space<vmem>>, %arg7: memref<640x128xf32, #tpu.memory_space<vmem>>, %arg8: memref<1x64xf32, #tpu.memory_space<vmem>>, %arg9: memref<1x64xf32, #tpu.memory_space<vmem>>, %arg10: memref<1x64xf32, #tpu.memory_space<vmem>>, %arg11: memref<64x256xf32, #tpu.memory_space<vmem>>, %arg12: memref<1x32x256xf32, #tpu.memory_space<vmem>>) attributes {dimension_semantics = [#tpu.dimension_semantics<parallel>], iteration_bounds = array<i64: 2>, scalar_prefetch = 0 : i64, scratch_operands = 0 : i64, tpu.core_type = #tpu.core_type<tc>, window_params = [{transform_indices = @transform_0, window_bounds = array<i64: 1, 32, 256>}, {pipeline_mode = #tpu.pipeline_mode<synchronous>, transform_indices = @transform_1, window_bounds = array<i64: 256, 64>}, {pipeline_mode = #tpu.pipeline_mode<synchronous>, transform_indices = @transform_2, window_bounds = array<i64: 1, 128>}, {pipeline_mode = #tpu.pipeline_mode<synchronous>, transform_indices = @transform_3, window_bounds = array<i64: 1, 128>}, {pipeline_mode = #tpu.pipeline_mode<synchronous>, transform_indices = @transform_4, window_bounds = array<i64: 1, 128>}, {pipeline_mode = #tpu.pipeline_mode<synchronous>, transform_indices = @transform_5, window_bounds = array<i64: 3, 128>}, {pipeline_mode = #tpu.pipeline_mode<synchronous>, transform_indices = @transform_6, window_bounds = array<i64: 640, 128>}, {pipeline_mode = #tpu.pipeline_mode<synchronous>, transform_indices = @transform_7, window_bounds = array<i64: 1, 64>}, {pipeline_mode = #tpu.pipeline_mode<synchronous>, transform_indices = @transform_8, window_bounds = array<i64: 1, 64>}, {pipeline_mode = #tpu.pipeline_mode<synchronous>, transform_indices = @transform_9, window_bounds = array<i64: 1, 64>}, {pipeline_mode = #tpu.pipeline_mode<synchronous>, transform_indices = @transform_10, window_bounds = array<i64: 64, 256>}, {transform_indices = @transform_11, window_bounds = array<i64: 1, 32, 256>}]} {
    %c0 = arith.constant 0 : index
    %c0_0 = arith.constant 0 : index
    %c0_1 = arith.constant 0 : index
    %0 = vector.load %arg1[%c0, %c0_0, %c0_1] : memref<1x32x256xf32, #tpu.memory_space<vmem>>, vector<1x32x256xf32>
    %1 = vector.shape_cast %0 : vector<1x32x256xf32> to vector<32x256xf32>
    %c0_2 = arith.constant 0 : index
    %c0_3 = arith.constant 0 : index
    %2 = vector.load %arg2[%c0_2, %c0_3] : memref<256x64xf32, #tpu.memory_space<vmem>>, vector<256x64xf32>
    %cst = arith.constant dense<0.000000e+00> : vector<32x64xf32>
    %3 = tpu.matmul %1, %2, %cst {dimension_numbers = #tpu.dot_dimension_numbers<[1], [0], [0], [1], [0, 0, 1, 1], [], []>} : vector<32x256xf32>, vector<256x64xf32>, vector<32x64xf32> -> vector<32x64xf32>
    %4 = tpu.concatenate %3, %3 in 1 : vector<32x64xf32>, vector<32x64xf32> -> vector<32x128xf32>
    %cst_4 = arith.constant 0.000000e+00 : f32
    %5 = vector.broadcast %cst_4 : f32 to vector<32x128xf32>
    %6 = arith.cmpf oge, %4, %5 : vector<32x128xf32>
    %c0_5 = arith.constant 0 : index
    %c0_6 = arith.constant 0 : index
    %7 = vector.load %arg3[%c0_5, %c0_6] : memref<1x128xf32, #tpu.memory_space<vmem>>, vector<1x128xf32>
    %8 = vector.broadcast %7 : vector<1x128xf32> to vector<32x128xf32>
    %9 = arith.mulf %8, %4 : vector<32x128xf32>
    %10 = arith.select %6, %4, %9 : vector<32x128xi1>, vector<32x128xf32>
    %cst_7 = arith.constant dense<0.000000e+00> : vector<128xf32>
    %11 = vector.multi_reduction <add>, %10, %cst_7 [0] : vector<32x128xf32> to vector<128xf32>
    %12 = vector.shape_cast %11 : vector<128xf32> to vector<1x128xf32>
    %cst_8 = arith.constant 3.200000e+01 : f32
    %13 = vector.broadcast %cst_8 : f32 to vector<1x128xf32>
    %14 = arith.divf %12, %13 : vector<1x128xf32>
    %15 = vector.broadcast %14 : vector<1x128xf32> to vector<32x128xf32>
    %16 = arith.subf %10, %15 : vector<32x128xf32>
    %17 = arith.mulf %16, %16 : vector<32x128xf32>
    %cst_9 = arith.constant dense<0.000000e+00> : vector<128xf32>
    %18 = vector.multi_reduction <add>, %17, %cst_9 [0] : vector<32x128xf32> to vector<128xf32>
    %19 = vector.shape_cast %18 : vector<128xf32> to vector<1x128xf32>
    %cst_10 = arith.constant 3.200000e+01 : f32
    %20 = vector.broadcast %cst_10 : f32 to vector<1x128xf32>
    %21 = arith.divf %19, %20 : vector<1x128xf32>
    %cst_11 = arith.constant 9.99999974E-6 : f32
    %22 = vector.broadcast %cst_11 : f32 to vector<1x128xf32>
    %23 = arith.addf %21, %22 : vector<1x128xf32>
    %24 = math.rsqrt %23 : vector<1x128xf32>
    %25 = vector.broadcast %24 : vector<1x128xf32> to vector<32x128xf32>
    %26 = arith.mulf %16, %25 : vector<32x128xf32>
    %c0_12 = arith.constant 0 : index
    %c0_13 = arith.constant 0 : index
    %27 = vector.load %arg4[%c0_12, %c0_13] : memref<1x128xf32, #tpu.memory_space<vmem>>, vector<1x128xf32>
    %28 = vector.broadcast %27 : vector<1x128xf32> to vector<32x128xf32>
    %29 = arith.mulf %26, %28 : vector<32x128xf32>
    %c0_14 = arith.constant 0 : index
    %c0_15 = arith.constant 0 : index
    %30 = vector.load %arg5[%c0_14, %c0_15] : memref<1x128xf32, #tpu.memory_space<vmem>>, vector<1x128xf32>
    %31 = vector.broadcast %30 : vector<1x128xf32> to vector<32x128xf32>
    %32 = arith.addf %29, %31 : vector<32x128xf32>
    %c0_16 = arith.constant 0 : index
    %c0_17 = arith.constant 0 : index
    %33 = vector.load %arg6[%c0_16, %c0_17] : memref<3x128xf32, #tpu.memory_space<vmem>>, vector<3x128xf32>
    %cst_18 = arith.constant 0.000000e+00 : f32
    %34 = vector.broadcast %cst_18 : f32 to vector<2x128xf32>
    %35 = tpu.concatenate %34, %32 in 0 : vector<2x128xf32>, vector<32x128xf32> -> vector<34x128xf32>
    %36 = vector.extract_strided_slice %33 {offsets = [0, 0], sizes = [1, 128], strides = [1, 1]} : vector<3x128xf32> to vector<1x128xf32>
    %37 = vector.extract_strided_slice %35 {offsets = [0, 0], sizes = [32, 128], strides = [1, 1]} : vector<34x128xf32> to vector<32x128xf32>
    %38 = vector.broadcast %36 : vector<1x128xf32> to vector<32x128xf32>
    %39 = arith.mulf %38, %37 : vector<32x128xf32>
    %40 = vector.extract_strided_slice %33 {offsets = [1, 0], sizes = [1, 128], strides = [1, 1]} : vector<3x128xf32> to vector<1x128xf32>
    %41 = vector.extract_strided_slice %35 {offsets = [1, 0], sizes = [32, 128], strides = [1, 1]} : vector<34x128xf32> to vector<32x128xf32>
    %42 = vector.broadcast %40 : vector<1x128xf32> to vector<32x128xf32>
    %43 = arith.mulf %42, %41 : vector<32x128xf32>
    %44 = arith.addf %39, %43 : vector<32x128xf32>
    %45 = vector.extract_strided_slice %33 {offsets = [2, 0], sizes = [1, 128], strides = [1, 1]} : vector<3x128xf32> to vector<1x128xf32>
    %46 = vector.extract_strided_slice %35 {offsets = [2, 0], sizes = [32, 128], strides = [1, 1]} : vector<34x128xf32> to vector<32x128xf32>
    %47 = vector.broadcast %45 : vector<1x128xf32> to vector<32x128xf32>
    %48 = arith.mulf %47, %46 : vector<32x128xf32>
    %49 = arith.addf %44, %48 : vector<32x128xf32>
    %cst_19 = arith.constant 0.000000e+00 : f32
    %50 = vector.broadcast %cst_19 : f32 to vector<8x128xf32>
    %51 = tpu.concatenate %50, %49 in 0 : vector<8x128xf32>, vector<32x128xf32> -> vector<40x128xf32>
    %52 = vector.extract_strided_slice %51 {offsets = [0, 0], sizes = [32, 128], strides = [1, 1]} : vector<40x128xf32> to vector<32x128xf32>
    %53 = vector.extract_strided_slice %51 {offsets = [2, 0], sizes = [32, 128], strides = [1, 1]} : vector<40x128xf32> to vector<32x128xf32>
    %54 = vector.extract_strided_slice %51 {offsets = [4, 0], sizes = [32, 128], strides = [1, 1]} : vector<40x128xf32> to vector<32x128xf32>
    %55 = vector.extract_strided_slice %51 {offsets = [6, 0], sizes = [32, 128], strides = [1, 1]} : vector<40x128xf32> to vector<32x128xf32>
    %56 = vector.extract_strided_slice %51 {offsets = [8, 0], sizes = [32, 128], strides = [1, 1]} : vector<40x128xf32> to vector<32x128xf32>
    %57 = tpu.concatenate %52, %53, %54, %55, %56 in 1 : vector<32x128xf32>, vector<32x128xf32>, vector<32x128xf32>, vector<32x128xf32>, vector<32x128xf32> -> vector<32x640xf32>
    %c0_20 = arith.constant 0 : index
    %c0_21 = arith.constant 0 : index
    %58 = vector.load %arg7[%c0_20, %c0_21] : memref<640x128xf32, #tpu.memory_space<vmem>>, vector<640x128xf32>
    %cst_22 = arith.constant dense<0.000000e+00> : vector<32x128xf32>
    %59 = tpu.matmul %57, %58, %cst_22 {dimension_numbers = #tpu.dot_dimension_numbers<[1], [0], [0], [1], [0, 0, 1, 1], [], []>} : vector<32x640xf32>, vector<640x128xf32>, vector<32x128xf32> -> vector<32x128xf32>
    %60 = vector.extract_strided_slice %59 {offsets = [0, 0], sizes = [32, 64], strides = [1, 1]} : vector<32x128xf32> to vector<32x64xf32>
    %61 = vector.extract_strided_slice %59 {offsets = [0, 64], sizes = [32, 64], strides = [1, 1]} : vector<32x128xf32> to vector<32x64xf32>
    %62 = arith.negf %61 : vector<32x64xf32>
    %63 = math.exp %62 : vector<32x64xf32>
    %cst_23 = arith.constant 1.000000e+00 : f32
    %64 = vector.broadcast %cst_23 : f32 to vector<32x64xf32>
    %65 = arith.addf %64, %63 : vector<32x64xf32>
    %66 = arith.divf %64, %65 : vector<32x64xf32>
    %67 = arith.mulf %60, %66 : vector<32x64xf32>
    %cst_24 = arith.constant 0.000000e+00 : f32
    %68 = vector.broadcast %cst_24 : f32 to vector<32x64xf32>
    %69 = arith.cmpf oge, %67, %68 : vector<32x64xf32>
    %c0_25 = arith.constant 0 : index
    %c0_26 = arith.constant 0 : index
    %70 = vector.load %arg8[%c0_25, %c0_26] : memref<1x64xf32, #tpu.memory_space<vmem>>, vector<1x64xf32>
    %71 = vector.broadcast %70 : vector<1x64xf32> to vector<32x64xf32>
    %72 = arith.mulf %71, %67 : vector<32x64xf32>
    %73 = arith.select %69, %67, %72 : vector<32x64xi1>, vector<32x64xf32>
    %cst_27 = arith.constant dense<0.000000e+00> : vector<64xf32>
    %74 = vector.multi_reduction <add>, %73, %cst_27 [0] : vector<32x64xf32> to vector<64xf32>
    %75 = vector.shape_cast %74 : vector<64xf32> to vector<1x64xf32>
    %cst_28 = arith.constant 3.200000e+01 : f32
    %76 = vector.broadcast %cst_28 : f32 to vector<1x64xf32>
    %77 = arith.divf %75, %76 : vector<1x64xf32>
    %78 = vector.broadcast %77 : vector<1x64xf32> to vector<32x64xf32>
    %79 = arith.subf %73, %78 : vector<32x64xf32>
    %80 = arith.mulf %79, %79 : vector<32x64xf32>
    %cst_29 = arith.constant dense<0.000000e+00> : vector<64xf32>
    %81 = vector.multi_reduction <add>, %80, %cst_29 [0] : vector<32x64xf32> to vector<64xf32>
    %82 = vector.shape_cast %81 : vector<64xf32> to vector<1x64xf32>
    %cst_30 = arith.constant 3.200000e+01 : f32
    %83 = vector.broadcast %cst_30 : f32 to vector<1x64xf32>
    %84 = arith.divf %82, %83 : vector<1x64xf32>
    %cst_31 = arith.constant 9.99999974E-6 : f32
    %85 = vector.broadcast %cst_31 : f32 to vector<1x64xf32>
    %86 = arith.addf %84, %85 : vector<1x64xf32>
    %87 = math.rsqrt %86 : vector<1x64xf32>
    %88 = vector.broadcast %87 : vector<1x64xf32> to vector<32x64xf32>
    %89 = arith.mulf %79, %88 : vector<32x64xf32>
    %c0_32 = arith.constant 0 : index
    %c0_33 = arith.constant 0 : index
    %90 = vector.load %arg9[%c0_32, %c0_33] : memref<1x64xf32, #tpu.memory_space<vmem>>, vector<1x64xf32>
    %91 = vector.broadcast %90 : vector<1x64xf32> to vector<32x64xf32>
    %92 = arith.mulf %89, %91 : vector<32x64xf32>
    %c0_34 = arith.constant 0 : index
    %c0_35 = arith.constant 0 : index
    %93 = vector.load %arg10[%c0_34, %c0_35] : memref<1x64xf32, #tpu.memory_space<vmem>>, vector<1x64xf32>
    %94 = vector.broadcast %93 : vector<1x64xf32> to vector<32x64xf32>
    %95 = arith.addf %92, %94 : vector<32x64xf32>
    %c0_36 = arith.constant 0 : index
    %c0_37 = arith.constant 0 : index
    %96 = vector.load %arg11[%c0_36, %c0_37] : memref<64x256xf32, #tpu.memory_space<vmem>>, vector<64x256xf32>
    %cst_38 = arith.constant dense<0.000000e+00> : vector<32x256xf32>
    %97 = tpu.matmul %95, %96, %cst_38 {dimension_numbers = #tpu.dot_dimension_numbers<[1], [0], [0], [1], [0, 0, 1, 1], [], []>} : vector<32x64xf32>, vector<64x256xf32>, vector<32x256xf32> -> vector<32x256xf32>
    %98 = arith.addf %97, %1 : vector<32x256xf32>
    %c0_39 = arith.constant 0 : index
    %c0_40 = arith.constant 0 : index
    %c0_41 = arith.constant 0 : index
    %99 = vector.load %arg12[%c0_39, %c0_40, %c0_41] : memref<1x32x256xf32, #tpu.memory_space<vmem>>, vector<1x32x256xf32>
    %100 = vector.shape_cast %99 : vector<1x32x256xf32> to vector<32x256xf32>
    %101 = vector.shape_cast %98 : vector<32x256xf32> to vector<1x32x256xf32>
    tpu.vector_store %arg12[%c0_39, %c0_40, %c0_41], %101 {strides = array<i32>} : memref<1x32x256xf32, #tpu.memory_space<vmem>>, vector<1x32x256xf32>,
    return
  }
  func.func @transform_0(%arg0: i32) -> (i32, i32, i32) {
    %c0_i32 = arith.constant 0 : i32
    %c0_i32_0 = arith.constant 0 : i32
    %c0_i32_1 = arith.constant 0 : i32
    return %arg0, %c0_i32, %c0_i32_0 : i32, i32, i32
  }
  func.func @transform_1(%arg0: i32) -> (i32, i32) {
    %c0_i32 = arith.constant 0 : i32
    %c0_i32_0 = arith.constant 0 : i32
    %c0_i32_1 = arith.constant 0 : i32
    return %c0_i32, %c0_i32_0 : i32, i32
  }
  func.func @transform_2(%arg0: i32) -> (i32, i32) {
    %c0_i32 = arith.constant 0 : i32
    %c0_i32_0 = arith.constant 0 : i32
    %c0_i32_1 = arith.constant 0 : i32
    return %c0_i32, %c0_i32_0 : i32, i32
  }
  func.func @transform_3(%arg0: i32) -> (i32, i32) {
    %c0_i32 = arith.constant 0 : i32
    %c0_i32_0 = arith.constant 0 : i32
    %c0_i32_1 = arith.constant 0 : i32
    return %c0_i32, %c0_i32_0 : i32, i32
  }
  func.func @transform_4(%arg0: i32) -> (i32, i32) {
    %c0_i32 = arith.constant 0 : i32
    %c0_i32_0 = arith.constant 0 : i32
    %c0_i32_1 = arith.constant 0 : i32
    return %c0_i32, %c0_i32_0 : i32, i32
  }
  func.func @transform_5(%arg0: i32) -> (i32, i32) {
    %c0_i32 = arith.constant 0 : i32
    %c0_i32_0 = arith.constant 0 : i32
    %c0_i32_1 = arith.constant 0 : i32
    return %c0_i32, %c0_i32_0 : i32, i32
  }
  func.func @transform_6(%arg0: i32) -> (i32, i32) {
    %c0_i32 = arith.constant 0 : i32
    %c0_i32_0 = arith.constant 0 : i32
    %c0_i32_1 = arith.constant 0 : i32
    return %c0_i32, %c0_i32_0 : i32, i32
  }
  func.func @transform_7(%arg0: i32) -> (i32, i32) {
    %c0_i32 = arith.constant 0 : i32
    %c0_i32_0 = arith.constant 0 : i32
    %c0_i32_1 = arith.constant 0 : i32
    return %c0_i32, %c0_i32_0 : i32, i32
  }
  func.func @transform_8(%arg0: i32) -> (i32, i32) {
    %c0_i32 = arith.constant 0 : i32
    %c0_i32_0 = arith.constant 0 : i32
    %c0_i32_1 = arith.constant 0 : i32
    return %c0_i32, %c0_i32_0 : i32, i32
  }
  func.func @transform_9(%arg0: i32) -> (i32, i32) {
    %c0_i32 = arith.constant 0 : i32
    %c0_i32_0 = arith.constant 0 : i32
    %c0_i32_1 = arith.constant 0 : i32
    return %c0_i32, %c0_i32_0 : i32, i32
  }
  func.func @transform_10(%arg0: i32) -> (i32, i32) {
    %c0_i32 = arith.constant 0 : i32
    %c0_i32_0 = arith.constant 0 : i32
    %c0_i32_1 = arith.constant 0 : i32
    return %c0_i32, %c0_i32_0 : i32, i32
  }
  func.func @transform_11(%arg0: i32) -> (i32, i32, i32) {
    %c0_i32 = arith.constant 0 : i32
    %c0_i32_0 = arith.constant 0 : i32
    %c0_i32_1 = arith.constant 0 : i32
    return %arg0, %c0_i32, %c0_i32_0 : i32, i32, i32
  }
}

</mosaic_0001>

<bundles_post_ra>
// kernel: glu_forward.1
= control target key start
LH: loop header
LB: loop body
LE: loop exit
PB: predicated region body
PF: predicated region fallthrough
CT: control target
= control target key end

     0   :  { %16 = vsyncpa [#allocation3], 0  ;;  %s2619_s0 = inlined_call_operand.vmem [shape: f32[2,32,256], index: 0, kind: input, shape index: {}]   ;;  %s2620_s1 = inlined_call_operand.vmem [shape: f32[256,64], index: 1, kind: input, shape index: {}]   ;;  %s2621_s2 = inlined_call_operand.vmem [shape: f32[1,128], index: 2, kind: input, shape index: {}]   ;;  %s2622_s3 = inlined_call_operand.vmem [shape: f32[1,128], index: 3, kind: input, shape index: {}]   ;;  %s2623_s4 = inlined_call_operand.vmem [shape: f32[1,128], index: 4, kind: input, shape index: {}]   ;;  %s2624_s5 = inlined_call_operand.vmem [shape: f32[3,128], index: 5, kind: input, shape index: {}]   ;;  %s2625_s6 = inlined_call_operand.vmem [shape: f32[640,128], index: 6, kind: input, shape index: {}]   ;;  %s2626_s7 = inlined_call_operand.vmem [shape: f32[1,64], index: 7, kind: input, shape index: {}]   ;;  %s2627_s8 = inlined_call_operand.vmem [shape: f32[1,64], index: 8, kind: input, shape index: {}]   ;;  %s2628_s9 = inlined_call_operand.vmem [shape: f32[1,64], index: 9, kind: input, shape index: {}]   ;;  %s2629_s10 = inlined_call_operand.vmem [shape: f32[64,256], index: 10, kind: input, shape index: {}]   ;;  %s2630_s11 = inlined_call_operand.hbm [shape: f32[2,32,256], index: 11, kind: output, shape index: {}]  }
   0x1   :  { %18 = vsyncpa [#allocation3 + $0x1], 0  ;;  %s1976_s17 = smov 0   ;;  %s1978_s18 = smov 0  }
   0x2   :  { %s1980_s19 = smov 0   ;;  %s1982_s20 = smov 0  }
   0x3 LB: > { %2634 = sst [smem:[#allocation5_spill]] %s1905_s19  ;;  %s1997_s21 = sadd.s32 4294967295, %s1909_s20   ;;  %s1909_s20 = sphi %s1982_s20, %s2644_s20   ;;  %s1905_s19 = sphi %s1980_s19, %s2643_s19   ;;  %s1901_s18 = sphi %s1978_s18, %s2642_s18   ;;  %s1897_s17 = sphi %s1976_s17, %s2641_s17  }
   0x4   : > { %s1406_s22 = sadd.s32 4294967294, %s1909_s20   ;;  %s2001_s23 = sadd.s32 1, %s1909_s20  }
   0x5   : > { %s267_s24 = sadd.s32 1, %s1905_s19  ;;  %s264_s25 = ssub.s32 %s1909_s20, %s2001_s23 }
   0x6   : > { %p277_p0 = scmp.ne.s32.totalorder %s1905_s19, %s1901_s18  ;;  %p265_p1 = scmp.eq.s32.totalorder %s264_s25, 0 }
   0x7   : > { %p278_p2 = scmp.eq.s32.totalorder %s1997_s21, 1  ;;  %p283_p3 = scmp.ne.s32.totalorder %s1901_s18, %s1897_s17 }
   0x8   : > { %p284_p4 = scmp.eq.s32.totalorder %s1406_s22, 1  ;;  %p1409_p7 = scmp.ge.s32.totalorder %s1909_s20, 1 }
   0x9   : > { %s2012_s26 = scalar_select %p265_p1, %s1905_s19, %s267_s24  }
   0xa   : > { %p2014_p5 = por %p278_p2, %p277_p0  ;;  %p2018_p6 = por %p284_p4, %p283_p3 }
   0xb   : > { %2635 = sst [smem:[#allocation6_spill]] %s2012_s26  ;;  %p340_p8 = scmp.lt.s32.totalorder %s1909_s20, 3 }
   0xd   : > { %p341_p9 = pnand %p1409_p7, %p340_p8 }
   0xe   : > { %v409_v0 = vld [vmem:[%s2620_s1 + $0x80] sm:$0xff] (!%p341_p9)  ;;  %v410_v1 = vld [vmem:[%s2620_s1 + $0x88] sm:$0xff] (!%p341_p9)  ;;  %p380_p10 = scmp.lt.s32.totalorder (!%p341_p9), %s1997_s21, 1  ;;  %v411_v5 = vld [vmem:[%s2620_s1 + $0x90] sm:$0xff] (!%p341_p9)  ;;  %s2632_s14 = smov (!%p341_p9), 64   ;;  %vm526_vm0 = vcmask (!%p341_p9), 523264  }
   0xf   : > { %344 = sbr.rel (%p341_p9) target bundleno = 1165 (0x48d), region = 64  ;;  %v393_v2 = vld [vmem:[%s2620_s1] sm:$0xff] (!%p341_p9)  ;;  %v1624_v3 = vpack.c.bf16 (!%p341_p9), %v410_v1, %v409_v0  ;;  %v394_v4 = vld [vmem:[%s2620_s1 + $0x8] sm:$0xff] (!%p341_p9)  ;;  %v412_v6 = vld [vmem:[%s2620_s1 + $0x98] sm:$0xff] (!%p341_p9)  ;;  %vm612_vm5 = vcmask (!%p341_p9), 1041408   ;;  %vm648_vm6 = vcmask (!%p341_p9), 1046528  }
  0x10   : > { %v1626_v7 = vpack.c.bf16 (!%p341_p9), %v394_v4, %v393_v2  ;;  %v1628_v8 = vpack.c.bf16 (!%p341_p9), %v412_v6, %v411_v5  ;;  %v395_v9 = vld [vmem:[%s2620_s1 + $0x10] sm:$0xff] (!%p341_p9)  ;;  %v396_v10 = vld [vmem:[%s2620_s1 + $0x18] sm:$0xff] (!%p341_p9)  ;;  %v413_v11 = vld [vmem:[%s2620_s1 + $0xa0] sm:$0xff] (!%p341_p9)  ;;  %vm680_vm7 = vcmask (!%p341_p9), 1045504   ;;  %vm716_vm8 = vcmask (!%p341_p9), 1043456   ;;  %s377_s13 = sand.u32 (!%p341_p9), 1, %s1901_s18  }
  0x11   : > { %1625 = vmatprep.subr.bf16.mxu0 (!%p341_p9), %v1624_v3  ;;  %v414_v12 = vld [vmem:[%s2620_s1 + $0xa8] sm:$0xff] (!%p341_p9)  ;;  %v1630_v13 = vpack.c.bf16 (!%p341_p9), %v396_v10, %v395_v9  ;;  %v397_v15 = vld [vmem:[%s2620_s1 + $0x20] sm:$0xff] (!%p341_p9)  ;;  %v415_v17 = vld [vmem:[%s2620_s1 + $0xb0] sm:$0xff] (!%p341_p9)  ;;  %s1410_s15 = sshll.u32 (!%p341_p9), %s377_s13, 6  ;;  %s2578_s25 = scalar_lea.sflag (!%p341_p9), [#allocation3], %s377_s13 }
  0x12   : > { %1627 = vmatpush3.bf16.msra.mxu0 (!%p341_p9), %v1626_v7  ;;  %v1632_v14 = vpack.c.bf16 (!%p341_p9), %v414_v12, %v413_v11  ;;  %v398_v16 = vld [vmem:[%s2620_s1 + $0x28] sm:$0xff] (!%p341_p9)  ;;  %v416_v18 = vld [vmem:[%s2620_s1 + $0xb8] sm:$0xff] (!%p341_p9)  ;;  %v399_v21 = vld [vmem:[%s2620_s1 + $0x30] sm:$0xff] (!%p341_p9)  ;;  %s379_s16 = scalar_lea.vmem (!%p341_p9), [#allocation2], %s1410_s15  ;;  %s1913_s30 = smov (!%p341_p9), [#allocation2]  }
  0x13   : > { %1629 = vmatprep.subr.bf16.mxu0 (!%p341_p9), %v1628_v8  ;;  %v1634_v19 = vpack.c.bf16 (!%p341_p9), %v398_v16, %v397_v15  ;;  %v1636_v20 = vpack.c.bf16 (!%p341_p9), %v416_v18, %v415_v17  ;;  %v400_v22 = vld [vmem:[%s2620_s1 + $0x38] sm:$0xff] (!%p341_p9)  ;;  %v417_v23 = vld [vmem:[%s2620_s1 + $0xc0] sm:$0xff] (!%p341_p9)  ;;  %v418_v24 = vld [vmem:[%s2620_s1 + $0xc8] sm:$0xff] (!%p341_p9)  ;;  %s1344_s22 = sshll.u32 (!%p341_p9), %s379_s16, 4  ;;  %s1851_s12 = sshll.u32 (!%p341_p9), %s1913_s30, 4  ;;  %s2572_s22 = int_to_ptr.vmem [resolvable:$true] %s1344_s22  ;;  %s1852_s12 = int_to_ptr.vmem [resolvable:$false] %s1851_s12 }
  0x14   : > { %v1638_v26 = vpack.c.bf16 (!%p341_p9), %v400_v22, %v399_v21  ;;  %v1640_v27 = vpack.c.bf16 (!%p341_p9), %v418_v24, %v417_v23  ;;  %v401_v28 = vld [vmem:[%s2620_s1 + $0x40] sm:$0xff] (!%p341_p9)  ;;  %v402_v29 = vld [vmem:[%s2620_s1 + $0x48] sm:$0xff] (!%p341_p9)  ;;  %v419_v30 = vld [vmem:[%s2620_s1 + $0xd0] sm:$0xff] (!%p341_p9)  ;;  %s1853_s15 = scalar_lea.vmem (!%p341_p9), %s1852_s12, 2048  ;;  %p1854_p0 = scmp.lt.s32.totalorder (!%p341_p9), %s2572_s22, %s1852_s12 }
  0x15   : > { %v420_v31 = vld [vmem:[%s2620_s1 + $0xd8] sm:$0xff] (!%p341_p9)  ;;  %v1642_v32 = vpack.c.bf16 (!%p341_p9), %v402_v29, %v401_v28  ;;  %v403_v34 = vld [vmem:[%s2620_s1 + $0x50] sm:$0xff] (!%p341_p9)  ;;  %v421_v36 = vld [vmem:[%s2620_s1 + $0xe0] sm:$0xff] (!%p341_p9) }
  0x16   : > { %s381_s24 = scalar_select %p380_p10, %s1997_s21, 1  ;;  %1631 = vmatpush3.bf16.msra.mxu0 %v1630_v13  ;;  %v1644_v33 = vpack.c.bf16 %v420_v31, %v419_v30  ;;  %v404_v35 = vld [vmem:[%s2620_s1 + $0x58] sm:$0xff]  ;;  %v422_v37 = vld [vmem:[%s2620_s1 + $0xe8] sm:$0xff]  ;;  %v405_v40 = vld [vmem:[%s2620_s1 + $0x60] sm:$0xff] }
  0x17   : > { %1633 = vmatprep.subr.bf16.mxu0 %v1632_v14  ;;  %v1646_v38 = vpack.c.bf16 %v404_v35, %v403_v34  ;;  %v1648_v39 = vpack.c.bf16 %v422_v37, %v421_v36  ;;  %v406_v41 = vld [vmem:[%s2620_s1 + $0x68] sm:$0xff]  ;;  %v423_v42 = vld [vmem:[%s2620_s1 + $0xf0] sm:$0xff]  ;;  %v424_v43 = vld [vmem:[%s2620_s1 + $0xf8] sm:$0xff] }
  0x18   : > { %s1432_s29 = sshll.u32 %s381_s24, 6  ;;  %v1650_v44 = vpack.c.bf16 %v406_v41, %v405_v40  ;;  %v1652_v45 = vpack.c.bf16 %v424_v43, %v423_v42  ;;  %v407_v46 = vld [vmem:[%s2620_s1 + $0x70] sm:$0xff]  ;;  %v408_v47 = vld [vmem:[%s2620_s1 + $0x78] sm:$0xff]  ;;  %v759_v4 = vld [vmem:[%s2625_s6 + $0x80] sm:$0xff]  ;;  %s1847_s24 = scalar_lea.vmem %s2572_s22, 1024 }
  0x19   : > { %s2071_s19 = scalar_lea.vmem %s2619_s0, %s1432_s29  ;;  %v1654_v48 = vpack.c.bf16 %v408_v47, %v407_v46  ;;  %v760_v5 = vld [vmem:[%s2625_s6 + $0x88] sm:$0xff]  ;;  %v743_v7 = vld [vmem:[%s2625_s6] sm:$0xff]  ;;  %v761_v16 = vld [vmem:[%s2625_s6 + $0x90] sm:$0xff]  ;;  %s2638_s29 = smov 64  }
  0x1a   : > { %v386_v25 = vld [vmem:[%s2071_s19 + $0x8] sm:$0xff]  ;;  %1635 = vmatpush3.bf16.msra.mxu0 %v1634_v19  ;;  %v385_v49 = vld [vmem:[%s2071_s19] sm:$0xff]  ;;  %v388_v50 = vld [vmem:[%s2071_s19 + $0x18] sm:$0xff]  ;;  %v1656_v6 = vpack.c.bf16 %v760_v5, %v759_v4  ;;  %p1848_p11 = scmp.ne.s32.totalorder %s2572_s22, %s1847_s24  ;;  %p1855_p1 = scmp.lt.s32.totalorder %s1853_s15, %s1847_s24 }
  0x1b   : > { %489 = vmatprep.mubr.f32.mxu0 %v386_v25  ;;  %1637 = vmatprep.subr.bf16.mxu0 %v1636_v20  ;;  %v387_v51 = vld [vmem:[%s2071_s19 + $0x10] sm:$0xff]  ;;  %v390_v52 = vld [vmem:[%s2071_s19 + $0x28] sm:$0xff]  ;;  %v389_v53 = vld [vmem:[%s2071_s19 + $0x20] sm:$0xff] }
  0x1c   : > { %v392_v54 = vld [vmem:[%s2071_s19 + $0x38] sm:$0xff]  ;;  %v391_v55 = vld [vmem:[%s2071_s19 + $0x30] sm:$0xff]  ;;  %v744_v8 = vld [vmem:[%s2625_s6 + $0x8] sm:$0xff]  ;;  %1657 = vmatprep.subr.bf16.mxu1 %v1656_v6  ;;  %p1849_p12 = pnand %p1848_p11, %p2014_p5  ;;  %p1856_p2 = por %p1855_p1, %p1854_p0 }
  0x1d   : > { %v791_v9 = vld [vmem:[%s2625_s6 + $0x180] sm:$0xff]  ;;  %v1658_v10 = vpack.c.bf16 %v744_v8, %v743_v7  ;;  %v792_v11 = vld [vmem:[%s2625_s6 + $0x188] sm:$0xff]  ;;  %v762_v17 = vld [vmem:[%s2625_s6 + $0x98] sm:$0xff] }
  0x1e   : > { %1639 = vmatpush3.bf16.msra.mxu0 %v1638_v26  ;;  %v775_v12 = vld [vmem:[%s2625_s6 + $0x100] sm:$0xff]  ;;  %v776_v13 = vld [vmem:[%s2625_s6 + $0x108] sm:$0xff]  ;;  %v1688_v14 = vpack.c.bf16 %v792_v11, %v791_v9  ;;  %v1660_v18 = vpack.c.bf16 %v762_v17, %v761_v16  ;;  %v745_v19 = vld [vmem:[%s2625_s6 + $0x10] sm:$0xff]  ;;  %p1850_p13 = pneg %p1849_p12 }
  0x1f   : > { %1641 = vmatprep.subr.bf16.mxu0 %v1640_v27  ;;  %v1690_v15 = vpack.c.bf16 %v776_v13, %v775_v12  ;;  %1659 = vmatpush3.bf16.msra.mxu1 %v1658_v10  ;;  %v746_v20 = vld [vmem:[%s2625_s6 + $0x18] sm:$0xff]  ;;  %v793_v21 = vld [vmem:[%s2625_s6 + $0x190] sm:$0xff]  ;;  %v763_v28 = vld [vmem:[%s2625_s6 + $0xa0] sm:$0xff] }
  0x20   : > { %v1662_v22 = vpack.c.bf16 %v746_v20, %v745_v19  ;;  %v794_v23 = vld [vmem:[%s2625_s6 + $0x198] sm:$0xff]  ;;  %v777_v24 = vld [vmem:[%s2625_s6 + $0x110] sm:$0xff]  ;;  %1661 = vmatprep.subr.bf16.mxu1 %v1660_v18  ;;  %v764_v29 = vld [vmem:[%s2625_s6 + $0xa8] sm:$0xff]  ;;  %p1857_p3 = pnand %p1856_p2, %p1850_p13 }
  0x21   : > { %v778_v25 = vld [vmem:[%s2625_s6 + $0x118] sm:$0xff]  ;;  %v1692_v26 = vpack.c.bf16 %v794_v23, %v793_v21  ;;  %v1664_v30 = vpack.c.bf16 %v764_v29, %v763_v28  ;;  %v747_v31 = vld [vmem:[%s2625_s6 + $0x20] sm:$0xff]  ;;  %v796_v35 = vld [vmem:[%s2625_s6 + $0x1a8] sm:$0xff] }
  0x22   : > { %1643 = vmatpush3.bf16.msra.mxu0 %v1642_v32  ;;  %v1694_v27 = vpack.c.bf16 %v778_v25, %v777_v24  ;;  %v748_v32 = vld [vmem:[%s2625_s6 + $0x28] sm:$0xff]  ;;  %v779_v36 = vld [vmem:[%s2625_s6 + $0x120] sm:$0xff]  ;;  %v765_v40 = vld [vmem:[%s2625_s6 + $0xb0] sm:$0xff] }
  0x23   : > { %1645 = vmatprep.subr.bf16.mxu0 %v1644_v33  ;;  %1663 = vmatpush3.bf16.msra.mxu1 %v1662_v22  ;;  %v795_v33 = vld [vmem:[%s2625_s6 + $0x1a0] sm:$0xff]  ;;  %v1666_v34 = vpack.c.bf16 %v748_v32, %v747_v31  ;;  %v780_v37 = vld [vmem:[%s2625_s6 + $0x128] sm:$0xff]  ;;  %v766_v41 = vld [vmem:[%s2625_s6 + $0xb8] sm:$0xff] }
  0x24   : > { %1665 = vmatprep.subr.bf16.mxu1 %v1664_v30  ;;  %v1668_v42 = vpack.c.bf16 %v766_v41, %v765_v40  ;;  %v749_v43 = vld [vmem:[%s2625_s6 + $0x30] sm:$0xff]  ;;  %v798_v47 = vld [vmem:[%s2625_s6 + $0x1b8] sm:$0xff]  ;;  %v771_v16 = vld [vmem:[%s2625_s6 + $0xe0] sm:$0xff] }
  0x25   : > { %v769_v4 = vld [vmem:[%s2625_s6 + $0xd0] sm:$0xff]  ;;  %v770_v5 = vld [vmem:[%s2625_s6 + $0xd8] sm:$0xff]  ;;  %v772_v17 = vld [vmem:[%s2625_s6 + $0xe8] sm:$0xff] }
  0x26   : > { %1647 = vmatpush3.bf16.msra.mxu0 %v1646_v38  ;;  %v1696_v38 = vpack.c.bf16 %v796_v35, %v795_v33  ;;  %v1676_v6 = vpack.c.bf16 %v770_v5, %v769_v4  ;;  %v753_v7 = vld [vmem:[%s2625_s6 + $0x50] sm:$0xff]  ;;  %v754_v8 = vld [vmem:[%s2625_s6 + $0x58] sm:$0xff]  ;;  %v755_v18 = vld [vmem:[%s2625_s6 + $0x60] sm:$0xff]  ;;  %v1680_v19 = vpack.c.bf16 %v772_v17, %v771_v16 }
  0x27   : > { %1649 = vmatprep.subr.bf16.mxu0 %v1648_v39  ;;  %v1698_v39 = vpack.c.bf16 %v780_v37, %v779_v36  ;;  %1667 = vmatpush3.bf16.msra.mxu1 %v1666_v34  ;;  %v801_v9 = vld [vmem:[%s2625_s6 + $0x1d0] sm:$0xff]  ;;  %v1678_v10 = vpack.c.bf16 %v754_v8, %v753_v7  ;;  %v802_v11 = vld [vmem:[%s2625_s6 + $0x1d8] sm:$0xff]  ;;  %v756_v20 = vld [vmem:[%s2625_s6 + $0x68] sm:$0xff] }
  0x28   : > { %1669 = vmatprep.subr.bf16.mxu1 %v1668_v42  ;;  %v785_v12 = vld [vmem:[%s2625_s6 + $0x150] sm:$0xff]  ;;  %v786_v13 = vld [vmem:[%s2625_s6 + $0x158] sm:$0xff]  ;;  %v803_v21 = vld [vmem:[%s2625_s6 + $0x1e0] sm:$0xff]  ;;  %v1682_v23 = vpack.c.bf16 %v756_v20, %v755_v18 }
  0x29   : > { %v804_v22 = vld [vmem:[%s2625_s6 + $0x1e8] sm:$0xff]  ;;  %v787_v25 = vld [vmem:[%s2625_s6 + $0x160] sm:$0xff]  ;;  %v774_v29 = vld [vmem:[%s2625_s6 + $0xf8] sm:$0xff] }
  0x2a   : > { %1651 = vmatpush3.bf16.msra.mxu0 %v1650_v44  ;;  %v750_v44 = vld [vmem:[%s2625_s6 + $0x38] sm:$0xff]  ;;  %v1712_v24 = vpack.c.bf16 %v804_v22, %v803_v21  ;;  %v757_v30 = vld [vmem:[%s2625_s6 + $0x70] sm:$0xff]  ;;  %v807_v40 = vld [vmem:[%s2625_s6 + $0x200] sm:$0xff] }
  0x2b   : > { %1653 = vmatprep.subr.bf16.mxu0 %v1652_v45  ;;  %v797_v45 = vld [vmem:[%s2625_s6 + $0x1b0] sm:$0xff]  ;;  %v1670_v46 = vpack.c.bf16 %v750_v44, %v749_v43  ;;  %v758_v31 = vld [vmem:[%s2625_s6 + $0x78] sm:$0xff]  ;;  %v808_v41 = vld [vmem:[%s2625_s6 + $0x208] sm:$0xff] }
  0x2c   : > { %v1686_v33 = vpack.c.bf16 %v758_v31, %v757_v30  ;;  %v805_v34 = vld [vmem:[%s2625_s6 + $0x1f0] sm:$0xff]  ;;  %v806_v35 = vld [vmem:[%s2625_s6 + $0x1f8] sm:$0xff]  ;;  %v2349_v42 = vpack.c.bf16 %v808_v41, %v807_v40 }
  0x2d   : > { %1671 = vmatpush3.bf16.msra.mxu1 %v1670_v46  ;;  %v789_v36 = vld [vmem:[%s2625_s6 + $0x170] sm:$0xff]  ;;  %v1716_v37 = vpack.c.bf16 %v806_v35, %v805_v34 }
  0x2e   : > { %1655 = vmatpush3.bf16.msra.mxu0 %v1654_v48  ;;  %v781_v48 = vld [vmem:[%s2625_s6 + $0x130] sm:$0xff] }
  0x2f   : > { %1689 = vmatprep.subr.bf16.mxu0 %v1688_v14  ;;  %v1708_v14 = vpack.c.bf16 %v802_v11, %v801_v9 }
  0x31   : > { %490 = vmatmul.mubr.f32.vlgmr.msra.gmra.mrb[0].mxu0 %v385_v49  ;;  %v782_v49 = vld [vmem:[%s2625_s6 + $0x138] sm:$0xff] }
  0x32   : > { %494 = vmatprep.mubr.f32.mxu0 %v388_v50  ;;  %1691 = vmatpush3.bf16.msra.mxu0 %v1690_v15  ;;  %v1700_v50 = vpack.c.bf16 %v798_v47, %v797_v45  ;;  %v1710_v15 = vpack.c.bf16 %v786_v13, %v785_v12  ;;  %v1413_v45 = vld [vmem:[%s2621_s2] ss:$0 sm:$0xff] }
  0x33   : > { %1693 = vmatprep.subr.bf16.mxu0 %v1692_v26  ;;  %v788_v26 = vld [vmem:[%s2625_s6 + $0x168] sm:$0xff] }
  0x34   : > { %v1714_v28 = vpack.c.bf16 %v788_v26, %v787_v25  ;;  %v626_v25 = vlaneseq }
  0x35   : > { %495 = vmatmul.mubr.f32.gmra.mrb[2].mxu0 %v387_v51  ;;  %v1702_v51 = vpack.c.bf16 %v782_v49, %v781_v48 }
  0x36   : > { %499 = vmatprep.mubr.f32.mxu0 %v390_v52  ;;  %1695 = vmatpush3.bf16.msra.mxu0 %v1694_v27  ;;  %v767_v52 = vld [vmem:[%s2625_s6 + $0xc0] sm:$0xff]  ;;  %v773_v27 = vld [vmem:[%s2625_s6 + $0xf0] sm:$0xff]  ;;  %v627_v26 = vshrl.u32 %v626_v25, 7 }
  0x37   : > { %1697 = vmatprep.subr.bf16.mxu0 %v1696_v38  ;;  %v1684_v32 = vpack.c.bf16 %v774_v29, %v773_v27  ;;  %v790_v38 = vld [vmem:[%s2625_s6 + $0x178] sm:$0xff] }
  0x38   : > { %v636_v34 = vsub.s32 1, %v627_v26  ;;  %v668_v35 = vsub.s32 2, %v627_v26  ;;  %v628_v41 = vsub.s32 0, %v627_v26 }
  0x39   : > { %500 = vmatmul.mubr.f32.gmra.mrb[4].mxu0 %v389_v53  ;;  %v768_v53 = vld [vmem:[%s2625_s6 + $0xc8] sm:$0xff] }
  0x3a   : > { %504 = vmatprep.mubr.f32.mxu0 %v392_v54  ;;  %1699 = vmatpush3.bf16.msra.mxu0 %v1698_v39  ;;  %v1672_v54 = vpack.c.bf16 %v768_v53, %v767_v52  ;;  %v1718_v39 = vpack.c.bf16 %v790_v38, %v789_v36  ;;  %v607_v36 = vld [vmem:[%s2624_s5] sm:$0x7] }
  0x3b   : > { %1701 = vmatprep.subr.bf16.mxu0 %v1700_v50 }
  0x3c   : > { %1673 = vmatprep.subr.bf16.mxu1 %v1672_v54 }
  0x3d   : > { %505 = vmatmul.mubr.f32.gmra.mrb[6].mxu0 %v391_v55  ;;  %v751_v55 = vld [vmem:[%s2625_s6 + $0x40] sm:$0xff] }
  0x3e   : > { %1703 = vmatpush3.bf16.msra.mxu0 %v1702_v51 }
 0x104   : > { %v1466_v56 = vpop.f32.mrb[0].mxu0 }
 0x105   : > { %v1467_v57 = vpop.f32.mrb[1].mxu0 }
 0x106   : > { %v2135_v58 = vadd.f32 %v1467_v57, %v1466_v56  ;;  %v752_v56 = vld [vmem:[%s2625_s6 + $0x48] sm:$0xff]  ;;  %v799_v57 = vld [vmem:[%s2625_s6 + $0x1c0] sm:$0xff] }
 0x108   : > { %v1469_v59 = vpop.f32.mrb[2].mxu0  ;;  %514 = vrot.lane.b32.xlu0 %v2135_v58, %s2632_s14 }
 0x109   : > { %v1470_v60 = vpop.f32.mrb[3].mxu0 }
 0x10a   : > { %v2139_v61 = vadd.f32 %v1470_v60, %v1469_v59  ;;  %v1674_v59 = vpack.c.bf16 %v752_v56, %v751_v55  ;;  %v800_v60 = vld [vmem:[%s2625_s6 + $0x1c8] sm:$0xff] }
 0x10c   : > { %v1472_v62 = vpop.f32.mrb[4].mxu0  ;;  %516 = vrot.lane.b32.xlu0 %v2139_v61, %s2632_s14  ;;  %1675 = vmatpush3.bf16.msra.mxu1 %v1674_v59 }
 0x10d   : > { %v1473_v63 = vpop.f32.mrb[5].mxu0  ;;  %1677 = vmatprep.subr.bf16.mxu1 %v1676_v6 }
 0x10e   : > { %v2143_v0 = vadd.f32 %v1473_v63, %v1472_v62  ;;  %v783_v62 = vld [vmem:[%s2625_s6 + $0x140] sm:$0xff]  ;;  %v784_v63 = vld [vmem:[%s2625_s6 + $0x148] sm:$0xff] }
 0x110   : > { %v1475_v1 = vpop.f32.mrb[6].mxu0  ;;  %518 = vrot.lane.b32.xlu1 %v2143_v0, %s2632_s14  ;;  %1679 = vmatpush3.bf16.msra.mxu1 %v1678_v10 }
 0x111   : > { %v1476_v2 = vpop.f32.mrb[7].mxu0  ;;  %1681 = vmatprep.subr.bf16.mxu1 %v1680_v19 }
 0x112   : > { %v2147_v3 = vadd.f32 %v1476_v2, %v1475_v1  ;;  %v1704_v1 = vpack.c.bf16 %v800_v60, %v799_v57  ;;  %v1706_v2 = vpack.c.bf16 %v784_v63, %v783_v62 }
 0x114   : > { %520 = vrot.lane.b32.xlu1 %v2147_v3, %s2632_s14  ;;  %1705 = vmatprep.subr.bf16.mxu0 %v1704_v1  ;;  %s1433_s14 = sshll.u32 %s1997_s21, 10 }
 0x115   : > { %1707 = vmatpush3.bf16.msra.mxu0 %v1706_v2  ;;  %1683 = vmatpush3.bf16.msra.mxu1 %v1682_v23  ;;  %s2570_s26 = scalar_lea.hbm %s2630_s11, %s1433_s14 }
 0x116   : > { %1709 = vmatprep.subr.bf16.mxu0 %v1708_v14  ;;  %1685 = vmatprep.subr.bf16.mxu1 %v1684_v32 }
 0x119   : > { %1711 = vmatpush3.bf16.msra.mxu0 %v1710_v15  ;;  %1687 = vmatpush3.bf16.msra.mxu1 %v1686_v33  ;;  %v1415_v33 = vld [vmem:[%s2623_s4] ss:$0 sm:$0xff] }
 0x11a   : > { %1713 = vmatprep.subr.bf16.mxu0 %v1712_v24  ;;  %1721 = vmatprep.subr.bf16.mxu1 %v2349_v42 }
 0x11d   : > { %1715 = vmatpush3.bf16.msra.mxu0 %v1714_v28  ;;  %v1414_v28 = vld [vmem:[%s2622_s3] ss:$0 sm:$0xff] }
 0x11e   : > { %1717 = vmatprep.subr.bf16.mxu0 %v1716_v37 }
 0x121   : > { %1719 = vmatpush3.bf16.msra.mxu0 %v1718_v39 }
 0x17a   : > { %v515_v43 = vpop.permute.xlu0 %514 }
 0x17b   : > { %v527_v46 = vsel %vm526_vm0, %v2135_v58, %v515_v43 }
 0x17c   : > { %v542_v49 = vmul.f32 %v1413_v45, %v527_v46  ;;  %vm531_vm2 = vcmp.ge.f32.partialorder %v527_v46, 0.0 }
 0x17e   : > { %v517_v44 = vpop.permute.xlu0 %516  ;;  %v546_v54 = vsel %vm531_vm2, %v527_v46, %v542_v49 }
 0x17f   : > { %v528_v47 = vsel %vm526_vm0, %v2139_v61, %v517_v44 }
 0x180   : > { %v543_v48 = vmul.f32 %v1413_v45, %v528_v47  ;;  %vm532_vm1 = vcmp.ge.f32.partialorder %v528_v47, 0.0 }
 0x182   : > { %v519_v50 = vpop.permute.xlu1 %518  ;;  %v547_v52 = vsel %vm532_vm1, %v528_v47, %v543_v48  ;;  %v637_v47 = vrot.slane %v607_v36, %v636_v34  ;;  %v669_v48 = vrot.slane %v607_v36, %v668_v35  ;;  %v810_v34 = vld [vmem:[%s2625_s6 + $0x218] sm:$0xff] }
 0x183   : > { %v529_v51 = vsel %vm526_vm0, %v2143_v0, %v519_v50  ;;  %v550_v57 = vadd.f32 %v547_v52, %v546_v54 }
 0x184   : > { %vm533_vm3 = vcmp.ge.f32.partialorder %v529_v51, 0.0  ;;  %v544_v53 = vmul.f32 %v1413_v45, %v529_v51 }
 0x186   : > { %v548_v55 = vsel %vm533_vm3, %v529_v51, %v544_v53  ;;  %v521_v56 = vpop.permute.xlu1 %520  ;;  %v629_v53 = vrot.slane %v607_v36, %v628_v41 }
 0x187   : > { %v530_v58 = vsel %vm526_vm0, %v2147_v3, %v521_v56  ;;  %v551_v59 = vadd.f32 %v550_v57, %v548_v55 }
 0x188   : > { %vm534_vm4 = vcmp.ge.f32.partialorder %v530_v58, 0.0  ;;  %v545_v61 = vmul.f32 %v1413_v45, %v530_v58 }
 0x18a   : > { %v549_v60 = vsel %vm534_vm4, %v530_v58, %v545_v61 }
 0x18b   : > { %v552_v62 = vadd.f32 %v551_v59, %v549_v60 }
 0x18d   : > { %v553_v63 = vrot.slane %v552_v62, 4 }
 0x18f   : > { %v554_v1 = vadd.f32 %v553_v63, %v552_v62 }
 0x191   : > { %v555_v2 = vrot.slane %v554_v1, 2 }
 0x193   : > { %v556_v4 = vadd.f32 %v555_v2, %v554_v1 }
 0x195   : > { %v557_v0 = vrot.slane %v556_v4, 1 }
 0x197   : > { %v558_v5 = vadd.f32 %v557_v0, %v556_v4 }
 0x199   : > { %v560_v6 = vmul.f32 0.03125, %v558_v5 }
 0x19b   : > { %v561_v7 = vsub.f32 %v546_v54, %v560_v6  ;;  %v562_v8 = vsub.f32 %v547_v52, %v560_v6  ;;  %v563_v9 = vsub.f32 %v548_v55, %v560_v6  ;;  %v564_v10 = vsub.f32 %v549_v60, %v560_v6 }
 0x19c   : > { %v1912_v54 = vmov 0.0  }
 0x19d   : > { %v565_v11 = vmul.f32 %v561_v7, %v561_v7  ;;  %v566_v12 = vmul.f32 %v562_v8, %v562_v8  ;;  %v567_v13 = vmul.f32 %v563_v9, %v563_v9  ;;  %v568_v14 = vmul.f32 %v564_v10, %v564_v10 }
 0x19e   : > { %v703_v55 = vrot.slane %v1912_v54, 2  ;;  %v730_v0 = vrot.slane %v1912_v54, 6 }
 0x19f   : > { %v569_v3 = vadd.f32 %v566_v12, %v565_v11 }
 0x1a1   : > { %v570_v15 = vadd.f32 %v569_v3, %v567_v13 }
 0x1a3   : > { %v571_v16 = vadd.f32 %v570_v15, %v568_v14 }
 0x1a5   : > { %v572_v17 = vrot.slane %v571_v16, 4 }
 0x1a7   : > { %v573_v18 = vadd.f32 %v572_v17, %v571_v16 }
 0x1a9   : > { %v574_v19 = vrot.slane %v573_v18, 2 }
 0x1ab   : > { %v575_v20 = vadd.f32 %v574_v19, %v573_v18 }
 0x1ad   : > { %v576_v21 = vrot.slane %v575_v20, 1 }
 0x1af   : > { %v577_v22 = vadd.f32 %v576_v21, %v575_v20 }
 0x1b1   : > { %v578_v23 = vmul.f32 0.03125, %v577_v22 }
 0x1b3   : > { %v579_v24 = vadd.f32 1e-05, %v578_v23 }
 0x1b5   : > { %1819 = vrsqrt.f32 %v579_v24 }
 0x1bf   : > { %v1820_v27 = vpop.eup %1819 }
 0x1c0   : > { %v581_v29 = vmul.f32 %v1820_v27, %v561_v7  ;;  %v582_v30 = vmul.f32 %v1820_v27, %v562_v8  ;;  %v583_v31 = vmul.f32 %v1820_v27, %v563_v9  ;;  %v584_v32 = vmul.f32 %v1820_v27, %v564_v10 }
 0x1c2   : > { %v592_v37 = vmul.f32 %v1414_v28, %v581_v29  ;;  %v593_v38 = vmul.f32 %v1414_v28, %v582_v30  ;;  %v594_v39 = vmul.f32 %v1414_v28, %v583_v31  ;;  %v595_v40 = vmul.f32 %v1414_v28, %v584_v32 }
 0x1c3   : > { %v717_v29 = vrot.slane %v1912_v54, 4 }
 0x1c4   : > { %v603_v43 = vadd.f32 %v1415_v33, %v592_v37  ;;  %v604_v44 = vadd.f32 %v1415_v33, %v593_v38  ;;  %v605_v45 = vadd.f32 %v1415_v33, %v594_v39  ;;  %v606_v46 = vadd.f32 %v1415_v33, %v595_v40  ;;  %v809_v33 = vld [vmem:[%s2625_s6 + $0x210] sm:$0xff] }
 0x1c6   : > { %v613_v49 = vrot.slane %v603_v43, 6  ;;  %v614_v50 = vrot.slane %v604_v44, 6  ;;  %v616_v51 = vrot.slane %v605_v45, 6  ;;  %v618_v52 = vrot.slane %v606_v46, 6 }
 0x1c8   : > { %v615_v56 = vsel %vm612_vm5, %v613_v49, %v614_v50  ;;  %v617_v57 = vsel %vm612_vm5, %v614_v50, %v616_v51  ;;  %v619_v58 = vsel %vm612_vm5, %v616_v51, %v618_v52  ;;  %v625_v61 = vsel %vm612_vm5, 0.0, %v613_v49  ;;  %v811_v49 = vld [vmem:[%s2625_s6 + $0x220] sm:$0xff]  ;;  %v812_v50 = vld [vmem:[%s2625_s6 + $0x228] sm:$0xff] }
 0x1c9   : > { %v638_v59 = vmul.f32 %v637_v47, %v625_v61  ;;  %v640_v60 = vmul.f32 %v637_v47, %v617_v57  ;;  %v641_v62 = vmul.f32 %v637_v47, %v619_v58  ;;  %v642_v63 = vmul.f32 %v637_v47, %v618_v52 }
 0x1ca   : > { %v673_v1 = vmul.f32 %v669_v48, %v619_v58  ;;  %v674_v2 = vmul.f32 %v669_v48, %v618_v52  ;;  %v639_v4 = vmul.f32 %v637_v47, %v615_v56  ;;  %v630_v6 = vmul.f32 %v629_v53, %v625_v61 }
 0x1cb   : > { %v654_v5 = vrot.slane %v641_v62, 1  ;;  %v649_v7 = vrot.slane %v638_v59, 1  ;;  %v670_v8 = vmul.f32 %v669_v48, %v625_v61  ;;  %v656_v9 = vrot.slane %v642_v63, 1 }
 0x1cc   : > { %v686_v10 = vrot.slane %v673_v1, 2  ;;  %v650_v11 = vrot.slane %v639_v4, 1  ;;  %v671_v12 = vmul.f32 %v669_v48, %v615_v56  ;;  %v631_v3 = vmul.f32 %v629_v53, %v615_v56 }
 0x1cd   : > { %v681_v13 = vrot.slane %v670_v8, 2  ;;  %v652_v14 = vrot.slane %v640_v60, 1  ;;  %v672_v15 = vmul.f32 %v669_v48, %v617_v57  ;;  %v632_v18 = vmul.f32 %v629_v53, %v617_v57  ;;  %v813_v60 = vld [vmem:[%s2625_s6 + $0x230] sm:$0xff] }
 0x1ce   : > { %v651_v16 = vsel %vm648_vm6, %v649_v7, %v650_v11  ;;  %v682_v17 = vrot.slane %v671_v12, 2  ;;  %v633_v19 = vmul.f32 %v629_v53, %v619_v58  ;;  %v657_v27 = vsel %vm648_vm6, %v654_v5, %v656_v9  ;;  %v816_v7 = vld [vmem:[%s2625_s6 + $0x248] sm:$0xff]  ;;  %v817_v12 = vld [vmem:[%s2625_s6 + $0x250] sm:$0xff] }
 0x1cf   : > { %v662_v20 = vadd.f32 %v651_v16, %v630_v6  ;;  %v653_v21 = vsel %vm648_vm6, %v650_v11, %v652_v14  ;;  %v684_v22 = vrot.slane %v672_v15, 2  ;;  %v655_v23 = vsel %vm648_vm6, %v652_v14, %v654_v5  ;;  %v815_v6 = vld [vmem:[%s2625_s6 + $0x240] sm:$0xff]  ;;  %v820_v15 = vld [vmem:[%s2625_s6 + $0x268] sm:$0xff] }
 0x1d0   : > { %v683_v24 = vsel %vm680_vm7, %v681_v13, %v682_v17  ;;  %v663_v25 = vadd.f32 %v653_v21, %v631_v3  ;;  %v664_v26 = vadd.f32 %v655_v23, %v632_v18  ;;  %v688_v31 = vrot.slane %v674_v2, 2  ;;  %v818_v13 = vld [vmem:[%s2625_s6 + $0x258] sm:$0xff]  ;;  %v819_v14 = vld [vmem:[%s2625_s6 + $0x260] sm:$0xff] }
 0x1d1   : > { %v2383_v28 = vadd.f32 %v683_v24, %v662_v20  ;;  %v685_v30 = vsel %vm680_vm7, %v682_v17, %v684_v22  ;;  %v687_v35 = vsel %vm680_vm7, %v684_v22, %v686_v10  ;;  %v665_v36 = vadd.f32 %v657_v27, %v633_v19  ;;  %v821_v17 = vld [vmem:[%s2625_s6 + $0x270] sm:$0xff]  ;;  %v822_v18 = vld [vmem:[%s2625_s6 + $0x278] sm:$0xff] }
 0x1d2   : > { %v2387_v32 = vadd.f32 %v685_v30, %v663_v25  ;;  %v2399_v40 = vadd.f32 %v687_v35, %v664_v26  ;;  %v1724_v47 = vpack.c.bf16 %v810_v34, %v809_v33  ;;  %v689_v51 = vsel %vm680_vm7, %v686_v10, %v688_v31 }
 0x1d3   : > { %v704_v37 = vrot.slane %v2383_v28, 2  ;;  %v731_v38 = vrot.slane %v2383_v28, 6  ;;  %v718_v39 = vrot.slane %v2383_v28, 4  ;;  %v1728_v58 = vpack.c.bf16 %v812_v50, %v811_v49 }
 0x1d4   : > { %v706_v41 = vrot.slane %v2387_v32, 2  ;;  %v733_v43 = vrot.slane %v2387_v32, 6  ;;  %v720_v48 = vrot.slane %v2387_v32, 4  ;;  %v708_v53 = vrot.slane %v2399_v40, 2 }
 0x1d5   : > { %v705_v44 = vsel %vm680_vm7, %v703_v55, %v704_v37  ;;  %v732_v45 = vsel %vm612_vm5, %v730_v0, %v731_v38  ;;  %v719_v46 = vsel %vm716_vm8, %v717_v29, %v718_v39  ;;  %v697_v55 = vadd.f32 %v689_v51, %v665_v36 }
 0x1d6   : > { %887 = vmatprep.mubr.f32.mxu1 %v705_v44  ;;  %972 = vmatprep.mubr.f32.mxu0 %v732_v45  ;;  %v707_v52 = vsel %vm680_vm7, %v704_v37, %v706_v41  ;;  %v734_v56 = vsel %vm612_vm5, %v731_v38, %v733_v43  ;;  %v735_v57 = vrot.slane %v2399_v40, 6  ;;  %v721_v61 = vsel %vm716_vm8, %v718_v39, %v720_v48 }
 0x1d7   : > { %888 = vmatmul.mubr.f32.vlgmr.msra.gmra.mrb[0].mxu1 %v1912_v54  ;;  %973 = vmatmul.mubr.f32.vlgmr.msra.gmra.mrb[8].mxu0 %v719_v46  ;;  %v722_v59 = vrot.slane %v2399_v40, 4  ;;  %v709_v62 = vsel %vm680_vm7, %v706_v41, %v708_v53  ;;  %v710_v63 = vrot.slane %v697_v55, 2  ;;  %v737_v2 = vrot.slane %v697_v55, 6 }
 0x1d8   : > { %1723 = vmatpush3.bf16.msra.mxu1 %v2349_v42  ;;  %892 = vmatprep.mubr.f32.mxu1 %v707_v52  ;;  %v814_v42 = vld [vmem:[%s2625_s6 + $0x238] sm:$0xff]  ;;  %v736_v1 = vsel %vm612_vm5, %v733_v43, %v735_v57  ;;  %v724_v5 = vrot.slane %v697_v55, 4  ;;  %v1736_v10 = vpack.c.bf16 %v816_v7, %v815_v6  ;;  %v1740_v3 = vpack.c.bf16 %v818_v13, %v817_v12  ;;  %v1205_v13 = vld [vmem:[%s2629_s10] sm:$0xff] }
 0x1d9   : > { %977 = vmatprep.mubr.f32.mxu0 %v734_v56  ;;  %1725 = vmatprep.subr.bf16.mxu1 %v1724_v47  ;;  %v1732_v4 = vpack.c.bf16 %v814_v42, %v813_v60  ;;  %v723_v0 = vsel %vm716_vm8, %v720_v48, %v722_v59  ;;  %v711_v8 = vsel %vm680_vm7, %v708_v53, %v710_v63 }
 0x1da   : > { %v738_v9 = vsel %vm612_vm5, %v735_v57, %v737_v2  ;;  %v725_v11 = vsel %vm716_vm8, %v722_v59, %v724_v5  ;;  %v1744_v16 = vpack.c.bf16 %v820_v15, %v819_v14  ;;  %v1748_v19 = vpack.c.bf16 %v822_v18, %v821_v17  ;;  %v1210_v15 = vld [vmem:[%s2629_s10 + $0x28] sm:$0xff]  ;;  %v1209_v18 = vld [vmem:[%s2629_s10 + $0x20] sm:$0xff] }
 0x1db   : > { %893 = vmatmul.mubr.f32.gmra.mrb[2].mxu1 %v2383_v28  ;;  %978 = vmatmul.mubr.f32.gmra.mrb[10].mxu0 %v721_v61 }
 0x1dc   : > { %1727 = vmatpush3.bf16.msra.mxu1 %v1724_v47  ;;  %897 = vmatprep.mubr.f32.mxu1 %v709_v62 }
 0x1dd   : > { %982 = vmatprep.mubr.f32.mxu0 %v736_v1  ;;  %1729 = vmatprep.subr.bf16.mxu1 %v1728_v58 }
 0x1df   : > { %898 = vmatmul.mubr.f32.gmra.mrb[4].mxu1 %v2387_v32  ;;  %983 = vmatmul.mubr.f32.gmra.mrb[12].mxu0 %v723_v0 }
 0x1e0   : > { %1731 = vmatpush3.bf16.msra.mxu1 %v1728_v58  ;;  %902 = vmatprep.mubr.f32.mxu1 %v711_v8 }
 0x1e1   : > { %987 = vmatprep.mubr.f32.mxu0 %v738_v9  ;;  %1733 = vmatprep.subr.bf16.mxu1 %v1732_v4 }
 0x1e3   : > { %903 = vmatmul.mubr.f32.gmra.mrb[6].mxu1 %v2399_v40  ;;  %988 = vmatmul.mubr.f32.gmra.mrb[14].mxu0 %v725_v11  ;;  %v1208_v11 = vld [vmem:[%s2629_s10 + $0x18] sm:$0xff] }
 0x1e4   : > { %1735 = vmatpush3.bf16.msra.mxu1 %v1732_v4  ;;  %1618 = vmatprep.mubr.f32.mxu1 %v2383_v28 }
 0x1e5   : > { %1737 = vmatprep.subr.bf16.mxu1 %v1736_v10  ;;  %1297 = vmatprep.mubr.f32.mxu0 %v1912_v54 }
 0x1e8   : > { %1739 = vmatpush3.bf16.msra.mxu1 %v1736_v10  ;;  %v1206_v10 = vld [vmem:[%s2629_s10 + $0x8] sm:$0xff] }
 0x1e9   : > { %1741 = vmatprep.subr.bf16.mxu1 %v1740_v3  ;;  %v1752_v12 = vpack.c.bf16 %v1208_v11, %v1206_v10 }
 0x1eb   : > { %1753 = vmatprep.subr.bf16.mxu0 %v1752_v12 }
 0x1ec   : > { %1743 = vmatpush3.bf16.msra.mxu1 %v1740_v3  ;;  %v1207_v3 = vld [vmem:[%s2629_s10 + $0x10] sm:$0xff] }
 0x1ed   : > { %1745 = vmatprep.subr.bf16.mxu1 %v1744_v16  ;;  %v1754_v14 = vpack.c.bf16 %v1207_v3, %v1205_v13 }
 0x1ef   : > { %1755 = vmatpush1.bf16.msra.mxu0 %v1754_v14 }
 0x1f0   : > { %1747 = vmatpush3.bf16.msra.mxu1 %v1744_v16  ;;  %v1212_v16 = vld [vmem:[%s2629_s10 + $0x38] sm:$0xff] }
 0x1f1   : > { %1749 = vmatprep.subr.bf16.mxu1 %v1748_v19  ;;  %v1756_v17 = vpack.c.bf16 %v1212_v16, %v1210_v15 }
 0x1f3   : > { %1757 = vmatprep.subr.bf16.mxu0 %v1756_v17 }
 0x1f4   : > { %1751 = vmatpush3.bf16.msra.mxu1 %v1748_v19  ;;  %v1211_v19 = vld [vmem:[%s2629_s10 + $0x30] sm:$0xff] }
 0x1f5   : > { %1768 = vmatprep.subr.bf16.mxu1 %v1752_v12 }
 0x1f7   : > { %1619 = vmatmul.mubr.f32.vlgmr.msra.gmra.mrb[8].mxu1 %v2387_v32 }
 0x1f8   : > { %1621 = vmatprep.mubr.f32.mxu1 %v2399_v40  ;;  %1772 = vmatpush1.bf16.msra.mxu1 %v1754_v14 }
 0x1f9   : > { %1769 = vmatprep.subr.bf16.mxu1 %v1756_v17 }
 0x1fb   : > { %1622 = vmatmul.mubr.f32.gmra.mrb[10].mxu1 %v697_v55 }
 0x1fc   : > { %1309 = vmatprep.mubr.f32.mxu1 %v1912_v54 }
 0x2aa   : > { %v1510_v20 = vpop.f32.mrb[0].mxu1  ;;  %v1554_v21 = vpop.f32.mrb[8].mxu0 }
 0x2ab   : > { %v1511_v22 = vpop.f32.mrb[1].mxu1  ;;  %v1555_v23 = vpop.f32.mrb[9].mxu0 }
 0x2ac   : > { %v1512_v24 = vadd.f32 %v1511_v22, %v1510_v20  ;;  %v1556_v25 = vadd.f32 %v1555_v23, %v1554_v21  ;;  %v1758_v20 = vpack.c.bf16 %v1211_v19, %v1209_v18  ;;  %v1214_v21 = vld [vmem:[%s2629_s10 + $0x48] sm:$0xff]  ;;  %v1216_v22 = vld [vmem:[%s2629_s10 + $0x58] sm:$0xff] }
 0x2ad   : > { %v1760_v23 = vpack.c.bf16 %v1216_v22, %v1214_v21 }
 0x2ae   : > { %v1513_v26 = vpop.f32.mrb[2].mxu1  ;;  %v1557_v27 = vpop.f32.mrb[10].mxu0  ;;  %v975_v28 = vadd.f32 %v1556_v25, %v1512_v24  ;;  %1759 = vmatpush1.bf16.msra.mxu0 %v1758_v20  ;;  %1773 = vmatpush1.bf16.msra.mxu1 %v1758_v20  ;;  %v1213_v24 = vld [vmem:[%s2629_s10 + $0x40] sm:$0xff]  ;;  %v1215_v25 = vld [vmem:[%s2629_s10 + $0x50] sm:$0xff] }
 0x2af   : > { %v1514_v29 = vpop.f32.mrb[3].mxu1  ;;  %v1558_v30 = vpop.f32.mrb[11].mxu0  ;;  %1761 = vmatprep.subr.bf16.mxu0 %v1760_v23  ;;  %1770 = vmatprep.subr.bf16.mxu1 %v1760_v23 }
 0x2b0   : > { %v1515_v31 = vadd.f32 %v1514_v29, %v1513_v26  ;;  %v1559_v33 = vadd.f32 %v1558_v30, %v1557_v27  ;;  %v1762_v26 = vpack.c.bf16 %v1215_v25, %v1213_v24  ;;  %v1218_v27 = vld [vmem:[%s2629_s10 + $0x68] sm:$0xff]  ;;  %v1217_v30 = vld [vmem:[%s2629_s10 + $0x60] sm:$0xff] }
 0x2b1   : > { %v1421_v25 = vld [vmem:[%s2627_s8] ss:$0 sm:$0xff] }
 0x2b2   : > { %v1516_v34 = vpop.f32.mrb[4].mxu1  ;;  %v1560_v32 = vpop.f32.mrb[12].mxu0  ;;  %v980_v35 = vadd.f32 %v1559_v33, %v1515_v31  ;;  %1763 = vmatpush1.bf16.msra.mxu0 %v1762_v26  ;;  %1774 = vmatpush1.bf16.msra.mxu1 %v1762_v26  ;;  %v1219_v31 = vld [vmem:[%s2629_s10 + $0x70] sm:$0xff] }
 0x2b3   : > { %v1517_v36 = vpop.f32.mrb[5].mxu1  ;;  %v1561_v37 = vpop.f32.mrb[13].mxu0  ;;  %v1766_v33 = vpack.c.bf16 %v1219_v31, %v1217_v30  ;;  %v1422_v30 = vld [vmem:[%s2628_s9] ss:$0 sm:$0xff] }
 0x2b4   : > { %v1518_v38 = vadd.f32 %v1517_v36, %v1516_v34  ;;  %v1562_v39 = vadd.f32 %v1561_v37, %v1560_v32  ;;  %v1420_v34 = vld [vmem:[%s2626_s7] ss:$0 sm:$0xff] }
 0x2b6   : > { %v1519_v40 = vpop.f32.mrb[6].mxu1  ;;  %v1563_v41 = vpop.f32.mrb[14].mxu0  ;;  %v985_v43 = vadd.f32 %v1562_v39, %v1518_v38 }
 0x2b7   : > { %v1520_v44 = vpop.f32.mrb[7].mxu1  ;;  %v1564_v45 = vpop.f32.mrb[15].mxu0 }
 0x2b8   : > { %v1521_v46 = vadd.f32 %v1520_v44, %v1519_v40  ;;  %v1565_v47 = vadd.f32 %v1564_v45, %v1563_v41 }
 0x2ba   : > { %v990_v48 = vadd.f32 %v1565_v47, %v1521_v46 }
 0x2ca   : > { %v1620_v49 = vpop.f32.mrb[8].mxu1 }
 0x2cb   : > { %v2466_v50 = vadd.f32 %v1620_v49, %v980_v35  ;;  %v1059_v51 = vpop.f32.mrb[9].mxu1 }
 0x2cc   : > { %v2468_v52 = vadd.f32 %v1059_v51, %v975_v28  ;;  %v1220_v28 = vld [vmem:[%s2629_s10 + $0x78] sm:$0xff] }
 0x2cd   : > { %v1417_v53 = vmul.f32 -1.442695, %v2466_v50  ;;  %v1764_v29 = vpack.c.bf16 %v1220_v28, %v1218_v27 }
 0x2ce   : > { %v1416_v55 = vmul.f32 -1.442695, %v2468_v52  ;;  %v1623_v56 = vpop.f32.mrb[10].mxu1 }
 0x2cf   : > { %1821 = vpow2.f32 %v1417_v53  ;;  %v2472_v57 = vadd.f32 %v1623_v56, %v990_v48  ;;  %v1069_v58 = vpop.f32.mrb[11].mxu1  ;;  %1765 = vmatprep.subr.bf16.mxu0 %v1764_v29  ;;  %1771 = vmatprep.subr.bf16.mxu1 %v1764_v29 }
 0x2d0   : > { %1823 = vpow2.f32 %v1416_v55  ;;  %v2474_v61 = vadd.f32 %v1069_v58, %v985_v43  ;;  %1767 = vmatpush1.bf16.msra.mxu0 %v1766_v33  ;;  %1775 = vmatpush1.bf16.msra.mxu1 %v1766_v33 }
 0x2d1   : > { %v1419_v59 = vmul.f32 -1.442695, %v2472_v57 }
 0x2d2   : > { %v1418_v60 = vmul.f32 -1.442695, %v2474_v61 }
 0x2d3   : > { %1825 = vpow2.f32 %v1419_v59 }
 0x2d4   : > { %1827 = vpow2.f32 %v1418_v60 }
 0x2d9   : > { %v1822_v42 = vpop.eup %1821 }
 0x2da   : > { %v1824_v62 = vpop.eup %1823  ;;  %v1091_v63 = vadd.f32 1.0, %v1822_v42 }
 0x2db   : > { %v1090_v1 = vadd.f32 1.0, %v1824_v62 }
 0x2dc   : > { %1829 = vrcp.f32 %v1091_v63 }
 0x2dd   : > { %v1826_v2 = vpop.eup %1825  ;;  %1831 = vrcp.f32 %v1090_v1 }
 0x2de   : > { %v1828_v4 = vpop.eup %1827  ;;  %v1093_v0 = vadd.f32 1.0, %v1826_v2 }
 0x2df   : > { %v1092_v5 = vadd.f32 1.0, %v1828_v4 }
 0x2e0   : > { %1833 = vrcp.f32 %v1093_v0 }
 0x2e1   : > { %1835 = vrcp.f32 %v1092_v5 }
 0x2e6   : > { %v1830_v6 = vpop.eup %1829 }
 0x2e7   : > { %v1832_v7 = vpop.eup %1831  ;;  %1108 = vrot.lane.b32.xlu1 %v1830_v6, %s2638_s29 }
 0x2e8   : > { %1106 = vrot.lane.b32.xlu0 %v1832_v7, %s2638_s29 }
 0x2ea   : > { %v1834_v8 = vpop.eup %1833 }
 0x2eb   : > { %v1836_v9 = vpop.eup %1835  ;;  %1112 = vrot.lane.b32.xlu1 %v1834_v8, %s2638_s29 }
 0x2ec   : > { %1110 = vrot.lane.b32.xlu0 %v1836_v9, %s2638_s29 }
 0x359   : > { %v1109_v32 = vpop.permute.xlu1 %1108 }
 0x35a   : > { %v1119_v35 = vmul.f32 %v1109_v32, %v2466_v50  ;;  %v1107_v36 = vpop.permute.xlu0 %1106 }
 0x35b   : > { %v1118_v37 = vmul.f32 %v1107_v36, %v2468_v52 }
 0x35c   : > { %vm1123_vm9 = vcmp.ge.f32.partialorder %v1119_v35, 0.0  ;;  %v1134_v38 = vmul.f32 %v1420_v34, %v1119_v35 }
 0x35d   : > { %vm1122_vm10 = vcmp.ge.f32.partialorder %v1118_v37, 0.0  ;;  %v1133_v39 = vmul.f32 %v1420_v34, %v1118_v37  ;;  %v1113_v40 = vpop.permute.xlu1 %1112 }
 0x35e   : > { %v1138_v41 = vsel %vm1123_vm9, %v1119_v35, %v1134_v38  ;;  %v1121_v43 = vmul.f32 %v1113_v40, %v2472_v57  ;;  %v1111_v44 = vpop.permute.xlu0 %1110 }
 0x35f   : > { %v1137_v45 = vsel %vm1122_vm10, %v1118_v37, %v1133_v39  ;;  %v1120_v46 = vmul.f32 %v1111_v44, %v2474_v61  ;;  %v1142_v47 = vsel %vm526_vm0, %v1138_v41, 0.0  ;;  %v1840_v44 = vld [vmem:[%s2071_s19 + $0x20] sm:$0xff] }
 0x360   : > { %v1141_v48 = vsel %vm526_vm0, %v1137_v45, 0.0  ;;  %vm1125_vm11 = vcmp.ge.f32.partialorder %v1121_v43, 0.0  ;;  %v1136_v49 = vmul.f32 %v1420_v34, %v1121_v43 }
 0x361   : > { %vm1124_vm12 = vcmp.ge.f32.partialorder %v1120_v46, 0.0  ;;  %v1135_v50 = vmul.f32 %v1420_v34, %v1120_v46  ;;  %v1143_v51 = vadd.f32 %v1142_v47, %v1141_v48  ;;  %v1841_v47 = vld [vmem:[%s2071_s19 + $0x8] sm:$0xff] }
 0x362   : > { %v1140_v52 = vsel %vm1125_vm11, %v1121_v43, %v1136_v49  ;;  %v1842_v49 = vld [vmem:[%s2071_s19 + $0x28] sm:$0xff] }
 0x363   : > { %v1139_v53 = vsel %vm1124_vm12, %v1120_v46, %v1135_v50  ;;  %v1146_v57 = vsel %vm526_vm0, %v1140_v52, 0.0 }
 0x364   : > { %v1144_v55 = vsel %vm526_vm0, %v1139_v53, 0.0 }
 0x365   : > { %v1145_v56 = vadd.f32 %v1144_v55, %v1143_v51 }
 0x367   : > { %v1147_v58 = vadd.f32 %v1146_v57, %v1145_v56  ;;  %v1844_v56 = vld [vmem:[%s2071_s19 + $0x30] sm:$0xff] }
 0x369   : > { %v1148_v59 = vrot.slane %v1147_v58, 4 }
 0x36b   : > { %v1149_v60 = vadd.f32 %v1148_v59, %v1147_v58 }
 0x36d   : > { %v1150_v61 = vrot.slane %v1149_v60, 2 }
 0x36f   : > { %v1151_v42 = vadd.f32 %v1150_v61, %v1149_v60  ;;  %v1845_v60 = vld [vmem:[%s2071_s19 + $0x18] sm:$0xff] }
 0x371   : > { %v1152_v62 = vrot.slane %v1151_v42, 1 }
 0x373   : > { %v1153_v63 = vadd.f32 %v1152_v62, %v1151_v42  ;;  %v1846_v42 = vld [vmem:[%s2071_s19 + $0x38] sm:$0xff] }
 0x375   : > { %v1154_v1 = vmul.f32 0.03125, %v1153_v63 }
 0x377   : > { %v1155_v2 = vsub.f32 %v1137_v45, %v1154_v1  ;;  %v1156_v4 = vsub.f32 %v1138_v41, %v1154_v1  ;;  %v1157_v0 = vsub.f32 %v1139_v53, %v1154_v1  ;;  %v1158_v5 = vsub.f32 %v1140_v52, %v1154_v1  ;;  %v1839_v41 = vld [vmem:[%s2071_s19] sm:$0xff]  ;;  %v1843_v53 = vld [vmem:[%s2071_s19 + $0x10] sm:$0xff] }
 0x379   : > { %v1159_v6 = vmul.f32 %v1155_v2, %v1155_v2  ;;  %v1160_v7 = vmul.f32 %v1156_v4, %v1156_v4  ;;  %v1161_v8 = vmul.f32 %v1157_v0, %v1157_v0  ;;  %v1162_v9 = vmul.f32 %v1158_v5, %v1158_v5 }
 0x37b   : > { %v1163_v10 = vsel %vm526_vm0, %v1159_v6, 0.0  ;;  %v1164_v11 = vsel %vm526_vm0, %v1160_v7, 0.0  ;;  %v1166_v13 = vsel %vm526_vm0, %v1161_v8, 0.0  ;;  %v1168_v14 = vsel %vm526_vm0, %v1162_v9, 0.0 }
 0x37c   : > { %v1165_v12 = vadd.f32 %v1164_v11, %v1163_v10 }
 0x37e   : > { %v1167_v3 = vadd.f32 %v1166_v13, %v1165_v12 }
 0x380   : > { %v1169_v15 = vadd.f32 %v1168_v14, %v1167_v3 }
 0x382   : > { %v1170_v16 = vrot.slane %v1169_v15, 4 }
 0x384   : > { %v1171_v17 = vadd.f32 %v1170_v16, %v1169_v15 }
 0x386   : > { %v1172_v18 = vrot.slane %v1171_v17, 2 }
 0x388   : > { %v1173_v19 = vadd.f32 %v1172_v18, %v1171_v17 }
 0x38a   : > { %v1174_v20 = vrot.slane %v1173_v19, 1 }
 0x38c   : > { %v1175_v21 = vadd.f32 %v1174_v20, %v1173_v19 }
 0x38e   : > { %v1176_v22 = vmul.f32 0.03125, %v1175_v21 }
 0x390   : > { %v1177_v23 = vadd.f32 1e-05, %v1176_v22 }
 0x392   : > { %1837 = vrsqrt.f32 %v1177_v23 }
 0x39c   : > { %v1838_v24 = vpop.eup %1837 }
 0x39d   : > { %v1179_v26 = vmul.f32 %v1838_v24, %v1155_v2  ;;  %v1181_v27 = vmul.f32 %v1838_v24, %v1157_v0  ;;  %v1180_v28 = vmul.f32 %v1838_v24, %v1156_v4  ;;  %v1182_v29 = vmul.f32 %v1838_v24, %v1158_v5 }
 0x39f   : > { %v1190_v31 = vmul.f32 %v1421_v25, %v1179_v26  ;;  %v1192_v33 = vmul.f32 %v1421_v25, %v1181_v27  ;;  %v1191_v35 = vmul.f32 %v1421_v25, %v1180_v28  ;;  %v1193_v36 = vmul.f32 %v1421_v25, %v1182_v29 }
 0x3a1   : > { %v1203_v34 = vadd.f32 %v1422_v30, %v1192_v33  ;;  %v1201_v32 = vadd.f32 %v1422_v30, %v1190_v31  ;;  %v1202_v37 = vadd.f32 %v1422_v30, %v1191_v35  ;;  %v1204_v38 = vadd.f32 %v1422_v30, %v1193_v36 }
 0x3a3   : > { %1423 = vmatmul.mubr.msk.f32.vlgmr.msra.gmra.mrb[16].mxu0 %vm526_vm0, %v1201_v32  ;;  %1425 = vmatmul.mubr.msk.f32.vlgmr.msra.gmra.mrb[12].mxu1 %vm526_vm0, %v1203_v34 }
 0x3a4   : > { %1303 = vmatprep.mubr.f32.mxu0 %v1912_v54  ;;  %1315 = vmatprep.mubr.f32.mxu1 %v1912_v54 }
 0x3a7   : > { %1424 = vmatmul.mubr.msk.f32.gmra.mrb[18].mxu0 %vm526_vm0, %v1202_v37  ;;  %1426 = vmatmul.mubr.msk.f32.gmra.mrb[14].mxu1 %vm526_vm0, %v1204_v38 }
 0x476   : > { %v1299_v39 = vpop.f32.mrb[16].mxu0  ;;  %v1311_v40 = vpop.f32.mrb[12].mxu1 }
 0x477   : > { %v1300_v43 = vadd.f32 %v1839_v41, %v1299_v39  ;;  %v1312_v45 = vadd.f32 %v1840_v44, %v1311_v40  ;;  %v1301_v46 = vpop.f32.mrb[17].mxu0  ;;  %v1313_v54 = vpop.f32.mrb[13].mxu1 }
 0x478   : > { %v1302_v48 = vadd.f32 %v1841_v47, %v1301_v46  ;;  %v1314_v50 = vadd.f32 %v1842_v49, %v1313_v54 }
 0x479   : > { %1322 = vst [vmem:[%s379_s16] sm:$0xff] %v1300_v43  ;;  %1326 = vst [vmem:[%s379_s16 + $0x20] sm:$0xff] %v1312_v45 }
 0x47a   : > { %1323 = vst [vmem:[%s379_s16 + $0x8] sm:$0xff] %v1302_v48  ;;  %1327 = vst [vmem:[%s379_s16 + $0x28] sm:$0xff] %v1314_v50  ;;  %v1305_v51 = vpop.f32.mrb[18].mxu0  ;;  %v1317_v52 = vpop.f32.mrb[14].mxu1 }
 0x47b   : > { %v1306_v55 = vadd.f32 %v1843_v53, %v1305_v51  ;;  %v1318_v57 = vadd.f32 %v1844_v56, %v1317_v52  ;;  %v1307_v58 = vpop.f32.mrb[19].mxu0  ;;  %v1319_v59 = vpop.f32.mrb[15].mxu1 }
 0x47c   : > { %v1308_v61 = vadd.f32 %v1845_v60, %v1307_v58  ;;  %v1320_v62 = vadd.f32 %v1846_v42, %v1319_v59 }
 0x47d   : > { %1324 = vst [vmem:[%s379_s16 + $0x10] sm:$0xff] %v1306_v55  ;;  %1328 = vst [vmem:[%s379_s16 + $0x30] sm:$0xff] %v1318_v57 }
 0x47e   : > { %1325 = vst [vmem:[%s379_s16 + $0x18] sm:$0xff] %v1308_v61  ;;  %1329 = vst [vmem:[%s379_s16 + $0x38] sm:$0xff] %v1320_v62 }
 0x47f   : > { %1860 = shalt.err (!%p1857_p3)
}
 0x480   : > { %s1861_s19 = scalar_lea.hbm %s2570_s26, 1024  ;;  %s1865_s16 = scalar_lea.hbm %s2630_s11, 2048 }
 0x481   : > { %p1862_p4 = scmp.ne.s32.totalorder %s2570_s26, %s1861_s19  ;;  %p1866_p9 = scmp.lt.u32.totalorder %s2570_s26, %s2630_s11 }
 0x482   : > { %p1867_p10 = scmp.lt.u32.totalorder %s1865_s16, %s1861_s19  ;;  %p1869_p12 = scmp.lt.u32.totalorder %s1861_s19, %s2570_s26 }
 0x483   : > { %p1863_p7 = pnand %p1862_p4, %p2014_p5 }
 0x484   : > { %p1868_p11 = por %p1867_p10, %p1866_p9 }
 0x485   : > { %p1864_p8 = pneg %p1863_p7 }
 0x486   : > { %p1870_p13 = por %p1869_p12, %p1868_p11 }
 0x488   : > { %p1871_p0 = pnand %p1870_p13, %p1864_p8 }
 0x48a   : > { %1874 = shalt.err (!%p1871_p0)
}
 0x48b   : > { %s1914_s24 = smov 256   ;;  %s1915_s30 = smov 16  }
 0x48c   : > { %1776 = dma.vmem_to_hbm [thread:$0]  (%p2014_p5), %s2572_s22, 1024, %s2570_s26, %s2578_s25, %s1914_s24, %s1914_s24, %s1915_s30  }
 0x48d PF: > { %p1782_p1 = scmp.ge.s32.totalorder %s1909_s20, 2  ;;  %s1359_s12 = sand.u32 1, %s1897_s17  }
 0x48e   : > { %s1360_s15 = scalar_lea.sflag [#allocation3], %s1359_s12 }
 0x48f   : > { %p1779_p2 = pnand %p1782_p1, %p2018_p6 }
 0x491   : > { %1892 = dma.done.wait (!%p1779_p2), %s1360_s15, 1024  }
 0x492   : > { %1894 = vsyncadd (!%p1779_p2), %s1360_s15, 4294966272  ;;  %s2639_s19 = sld [smem:[#allocation5_spill]]  ;;  %s2640_s13 = sld [smem:[#allocation6_spill]] }
 0x493   : > { %p21_p3 = scmp.ge.s32.totalorder %s2001_s23, 4   ;;  %s2641_s17 = smov %s1901_s18 }
 0x494   : > { %s2644_s20 = smov %s2001_s23 }
 0x495   :  { %23 = sbr.rel (!%p21_p3) target bundleno = 3 (0x3), region = 99 }
 0x498   : > { %s2642_s18 = smov %s2639_s19  ;;  %s2643_s19 = smov %s2640_s13 }
 0x49c   :  { %1365 = vsyncpa [#allocation3], 1 }
 0x49d   :  { %1367 = vsyncpa [#allocation3 + $0x1], 1 }

</bundles_post_ra>
